<compile_context>
chip_gen: v7x
topology: tpu7x:2x2x1
jax: 0.10.0
libtpu: 0.0.40
codegen_flags: <defaults>
</compile_context>

<pallas_src>
import jax
import jax.numpy as jnp
import numpy as np
from jax import lax
from jax.experimental import pallas as pl
from jax.experimental.pallas import tpu as pltpu


# ----------------------------------------------------------------------------------
# Kernels
# ----------------------------------------------------------------------------------
def _upconv_taps_kernel(x_ref, w_ref, b_ref, o_ref):
    """General path: 9 accumulating MXU matmuls (one per 3x3 tap).

    x_ref: (1, H+2, W+2, C_in)      1-padded ORIGINAL-resolution image (NHWC),
                                    VMEM-resident across the inner row-tile axis.
    w_ref: (9, C_in, 4*C_out_pad)   per-tap weights; upsample parity sharing and the
                                    BN scale folded in; channel axis lane-padded.
    b_ref: (1, 4*C_out_pad)         folded bias (conv bias + BN shift), f32.
    o_ref: (1, TH*W, 4*C_out_pad)   output tile: rows = tile pixels (orig. res.),
                                    cols = (row-parity, col-parity, out-channel).
    """
    C_in = x_ref.shape[3]
    W = x_ref.shape[2] - 2
    n_pix = o_ref.shape[1]                      # TH * W
    n_out = o_ref.shape[2]                      # 4 * C_out_pad
    TH = n_pix // W

    r0 = pl.multiple_of(pl.program_id(1) * TH, 8 if TH % 8 == 0 else 1)
    xw = x_ref[0, pl.ds(r0, TH + 2)]            # (TH+2, W+2, C_in): tile rows + halo

    acc = jnp.zeros((n_pix, n_out), dtype=jnp.float32)
    for r in range(3):
        for u in range(3):
            slab = xw[r:r + TH, u:u + W, :].reshape(n_pix, C_in)
            acc = acc + jnp.dot(slab, w_ref[3 * r + u],
                                preferred_element_type=jnp.float32)

    o_ref[0] = jnp.maximum(acc + b_ref[...], 0.0).astype(o_ref.dtype)


def _upconv_im2col_kernel(x_ref, w_ref, b_ref, o_ref, col_ref):
    """C_in % 128 == 0 path: one im2col scratch + a single K = 9*C_in matmul.

    col_ref: (TH*W, 9*C_in) VMEM scratch; the 9 stores land at lane offsets k*C_in,
    which are 128-aligned by the C_in % 128 == 0 precondition.
    """
    C_in = x_ref.shape[3]
    W = x_ref.shape[2] - 2
    n_pix = o_ref.shape[1]
    TH = n_pix // W

    r0 = pl.multiple_of(pl.program_id(1) * TH, 8 if TH % 8 == 0 else 1)
    xw = x_ref[0, pl.ds(r0, TH + 2)]

    for r in range(3):
        for u in range(3):
            k = 3 * r + u
            col_ref[:, k * C_in:(k + 1) * C_in] = \
                xw[r:r + TH, u:u + W, :].reshape(n_pix, C_in)

    acc = jnp.dot(col_ref[...], w_ref[...], preferred_element_type=jnp.float32)
    o_ref[0] = jnp.maximum(acc + b_ref[...], 0.0).astype(o_ref.dtype)


# ----------------------------------------------------------------------------------
# Weight folding (upsample parity sharing + inference-BN scale/shift + lane padding)
# ----------------------------------------------------------------------------------
def _fold_parity_weights(w_hwio, conv_bias, gamma, beta, run_mean, run_var, eps,
                         c_out_pad, compute_dtype):
    """Returns
      w9 : (9, C_in, 4*c_out_pad)  tap (r, u) of the 3x3 window on the 1-padded
           ORIGINAL image; output column block pa = 2*a + b is the pixel parity.
      b4 : (1, 4*c_out_pad)        (conv_bias - running_mean)*scale + beta, per parity
           (f32, padded channels are zero)."""
    C_in, C_out = int(w_hwio.shape[2]), int(w_hwio.shape[3])
    pad = c_out_pad - C_out
    inv_std = 1.0 / jnp.sqrt(run_var + eps)
    scale = gamma * inv_std                                   # (C_out,)
    bias = (conv_bias - run_mean) * scale + beta              # (C_out,)

    # For output-row parity a, conv tap kh reads window row p of the padded ORIGINAL
    # image (output row = 2i + a):
    #   a=0: kh=0 -> p=0 ; kh in {1,2} -> p=1
    #   a=1: kh in {0,1} -> p=0 ; kh=2 -> p=1
    # (same mapping for columns / parity b).  Exact because the 2x nearest upsample
    # replicates every original pixel into a 2x2 block.
    taps = {(0, 0): (0,), (0, 1): (1, 2), (1, 0): (0, 1), (1, 1): (2,)}

    zeros_pad = jnp.zeros((C_in, c_out_pad), dtype=jnp.float32)
    tap_blocks = []
    for r in range(3):
        for u in range(3):
            parity_blocks = []
            for a in range(2):
                for b in range(2):
                    p, q = r - a, u - b
                    if p in (0, 1) and q in (0, 1):
                        w_eff = jnp.zeros((C_in, C_out), dtype=jnp.float32)
                        for kh in taps[(a, p)]:
                            for kw in taps[(b, q)]:
                                w_eff = w_eff + w_hwio[kh, kw]
                        w_eff = w_eff * scale[None, :]        # BN scale folded in
                        parity_blocks.append(jnp.pad(w_eff, ((0, 0), (0, pad))))
                    else:
                        parity_blocks.append(zeros_pad)
            tap_blocks.append(jnp.concatenate(parity_blocks, axis=1))
    w9 = jnp.stack(tap_blocks, axis=0).astype(compute_dtype)      # (9, C_in, 4*Cp)
    b4 = jnp.tile(jnp.pad(bias, (0, pad)), 4).reshape(1, 4 * c_out_pad)
    return w9, b4.astype(jnp.float32)


# ----------------------------------------------------------------------------------
# Tiling / VMEM budgeting
# ----------------------------------------------------------------------------------
def _vmem_budget_bytes():
    """Generation-aware VMEM budget (75% of capacity; conservative 48 MiB fallback
    so the same choice is safe on v5e / v6e / v7x)."""
    try:
        cap = int(pltpu.get_tpu_info().vmem_capacity_bytes)
    except Exception:
        cap = 64 * 1024 * 1024
    return max(16 * 1024 * 1024, (cap * 3) // 4)


def _choose_row_tile(H, W, C_in, n_out, in_bytes, out_bytes, budget, use_im2col,
                     batch):
    """Row tile TH (ORIGINAL-image rows): divides H, TH % 8 == 0 (or TH == H), and
    the double-buffered image + weights + output tiles + accumulator + scratch fit
    the generation-aware VMEM budget.  Output slab capped at ~8 MiB/buffer so the
    per-step overhead stays amortized without chasing diminishing returns."""
    img_bytes = (H + 2) * (W + 2) * C_in * in_bytes
    w_bytes = 9 * C_in * n_out * in_bytes
    fixed = 2 * img_bytes + 2 * w_bytes + 2 * n_out * 4

    def per_tile(th):
        pix = th * W
        out_tile = 2 * pix * n_out * out_bytes                 # double-buffered output
        acc = pix * n_out * 4                                  # f32 accumulator
        scratch = pix * (9 * C_in if use_im2col else C_in) * in_bytes
        return out_tile + acc + scratch

    cands = sorted({d for d in range(8, H + 1, 8) if H % d == 0} | {H})
    fits = [d for d in cands if fixed + per_tile(d) <= budget]
    good = [d for d in fits if d * W * n_out * out_bytes <= 8 * 1024 * 1024]

    pick = good[-1] if good else (fits[0] if fits else cands[0])
    # Prefer at least 2 grid steps overall so the pipeline has depth (tiny batches).
    if batch * (H // pick) < 2:
        smaller = [d for d in (good or fits or cands) if d < pick]
        if smaller:
            pick = smaller[-1]
    return pick


# ----------------------------------------------------------------------------------
# Wrapper
# ----------------------------------------------------------------------------------
def up_conv_pallas(x_nchw, weight_hwio, conv_bias, gamma, beta, run_mean, run_var,
                   eps=1e-5, compute_dtype=jnp.bfloat16, out_dtype=None):
    """Forward pass of up_conv (inference BatchNorm). x_nchw: (N, C_in, H, W) f32.

    compute_dtype=jnp.bfloat16 (default): bf16 inputs/weights/output, f32 accumulate.
    compute_dtype=jnp.float32: exact-tolerance verification mode."""
    if out_dtype is None:
        out_dtype = compute_dtype
    N, C_in, H, W = map(int, x_nchw.shape)
    C_out = int(weight_hwio.shape[-1])

    # Lane-dense padding of the parity-blocked channel axis: 4*C_out_pad % 128 == 0.
    C_out_pad = ((C_out + 31) // 32) * 32
    n_out = 4 * C_out_pad

    # Layout plumbing at ORIGINAL resolution only (the 2x-upsampled tensor is never
    # materialized in HBM or VMEM): NCHW -> NHWC + 1-pixel spatial zero pad.
    x_nhwc = jnp.transpose(x_nchw, (0, 2, 3, 1)).astype(compute_dtype)
    x_pad = jnp.pad(x_nhwc, ((0, 0), (1, 1), (1, 1), (0, 0)))   # (N, H+2, W+2, C_in)

    w9, b4 = _fold_parity_weights(weight_hwio, conv_bias, gamma, beta,
                                  run_mean, run_var, eps, C_out_pad, compute_dtype)

    in_bytes = jnp.dtype(compute_dtype).itemsize
    out_bytes = jnp.dtype(out_dtype).itemsize
    budget = _vmem_budget_bytes()
    use_im2col = (C_in % 128 == 0)

    TH = _choose_row_tile(H, W, C_in, n_out, in_bytes, out_bytes, budget,
                          use_im2col, N)
    T = H // TH

    # Input block indexed only by the batch axis: stays VMEM-resident across the
    # inner row-tile axis (one input DMA per image).
    x_spec = pl.BlockSpec((1, H + 2, W + 2, C_in), lambda n, t: (n, 0, 0, 0))
    img_bytes = (H + 2) * (W + 2) * C_in * in_bytes
    est3 = (3 * img_bytes + 2 * 9 * C_in * n_out * in_bytes
            + 2 * TH * W * n_out * out_bytes + TH * W * n_out * 4
            + TH * W * (9 * C_in if use_im2col else C_in) * in_bytes)
    if N * T >= 3 and est3 <= budget:
        # Hide the image-boundary input DMA under two tiles of compute.
        try:
            x_spec = pl.BlockSpec((1, H + 2, W + 2, C_in),
                                  lambda n, t: (n, 0, 0, 0),
                                  pipeline_mode=pl.Buffered(3))
        except Exception:
            pass  # older jax without pipeline_mode: keep default double-buffering

    if use_im2col:
        kernel = _upconv_im2col_kernel
        w_arr = w9.reshape(9 * C_in, n_out)
        w_spec = pl.BlockSpec((9 * C_in, n_out), lambda n, t: (0, 0))
        scratch = [pltpu.VMEM((TH * W, 9 * C_in), compute_dtype)]
    else:
        kernel = _upconv_taps_kernel
        w_arr = w9
        w_spec = pl.BlockSpec((9, C_in, n_out), lambda n, t: (0, 0, 0))
        scratch = []

    flops = 2 * N * H * W * 9 * C_in * n_out
    bytes_accessed = (x_pad.size * in_bytes + w_arr.size * in_bytes + b4.size * 4
                      + N * H * W * n_out * out_bytes)

    out3 = pl.pallas_call(
        kernel,
        out_shape=jax.ShapeDtypeStruct((N, H * W, n_out), out_dtype),
        grid_spec=pltpu.PrefetchScalarGridSpec(
            num_scalar_prefetch=0,
            grid=(N, T),     # row-tile axis innermost -> image stays VMEM-resident
            in_specs=[
                x_spec,
                w_spec,
                pl.BlockSpec((1, n_out), lambda n, t: (0, 0)),
            ],
            out_specs=pl.BlockSpec((1, TH * W, n_out), lambda n, t: (n, t, 0)),
            scratch_shapes=scratch,
        ),
        compiler_params=pltpu.CompilerParams(
            # N >= 2: whole images per TensorCore (no duplicate resident-image DMA
            # on v7x's two cores); N == 1: let the row tiles spread across cores.
            dimension_semantics=(("parallel", "arbitrary") if N >= 2
                                 else ("parallel", "parallel")),
            vmem_limit_bytes=int(budget),
        ),
        cost_estimate=pl.CostEstimate(flops=flops, transcendentals=0,
                                      bytes_accessed=int(bytes_accessed)),
    )(x_pad, w_arr, b4)

    # Un-pack the parity-blocked output (pure layout plumbing, fused by XLA):
    #   (N, H*W, 4*C_out_pad) -> (n, i, j, a, b, c) -> NCHW rows 2i+a, cols 2j+b.
    out6 = out3.reshape(N, H, W, 2, 2, C_out_pad)[..., :C_out]
    return jnp.transpose(out6, (0, 5, 1, 3, 2, 4)).reshape(N, C_out, 2 * H, 2 * W)


# ----------------------------------------------------------------------------------
# Pure-JAX reference (same semantics) for correctness checks
# ----------------------------------------------------------------------------------
def _reference(x_nchw, weight_hwio, conv_bias, gamma, beta, run_mean, run_var,
               eps=1e-5):
    x_up = jnp.repeat(jnp.repeat(x_nchw, 2, axis=2), 2, axis=3)
    x_nhwc = jnp.transpose(x_up, (0, 2, 3, 1))
    y = lax.conv_general_dilated(
        x_nhwc, weight_hwio, window_strides=(1, 1), padding="SAME",
        dimension_numbers=("NHWC", "HWIO", "NHWC"))
    y = y + conv_bias
    y = (y - run_mean) / jnp.sqrt(run_var + eps) * gamma + beta
    y = jnp.maximum(y, 0.0)
    return jnp.transpose(y, (0, 3, 1, 2))


if __name__ == "__main__":
    # Small shapes consistent with up_conv: batch=2, ch_in=4, ch_out=8, spatial 16x16.
    N, C_in, C_out, H, W = 2, 4, 8, 16, 16

    key = jax.random.PRNGKey(0)
    kx, kw, kb, kg, kbe, km, kv = jax.random.split(key, 7)

    x = jax.random.normal(kx, (N, C_in, H, W), dtype=jnp.float32)
    # Conv2d(ch_in, ch_out, 3) weights; PyTorch stores OIHW, kernel uses HWIO.
    w_oihw = jax.random.normal(kw, (C_out, C_in, 3, 3), dtype=jnp.float32) * 0.1
    w_hwio = jnp.transpose(w_oihw, (2, 3, 1, 0))
    conv_bias = jax.random.normal(kb, (C_out,), dtype=jnp.float32) * 0.1
    # BatchNorm2d(ch_out) parameters (deterministic, inference mode).
    gamma = 1.0 + 0.1 * jax.random.normal(kg, (C_out,), dtype=jnp.float32)
    beta = 0.1 * jax.random.normal(kbe, (C_out,), dtype=jnp.float32)
    run_mean = 0.1 * jax.random.normal(km, (C_out,), dtype=jnp.float32)
    run_var = 1.0 + 0.1 * jax.random.uniform(kv, (C_out,), dtype=jnp.float32)

    ref = jax.block_until_ready(
        _reference(x, w_hwio, conv_bias, gamma, beta, run_mean, run_var))

    up_conv = jax.jit(up_conv_pallas, static_argnames=("compute_dtype", "out_dtype"))

    # 1) f32 verification path: exact-tolerance match against the f32 reference.
    out_f32 = jax.block_until_ready(
        up_conv(x, w_hwio, conv_bias, gamma, beta, run_mean, run_var,
                compute_dtype=jnp.float32))
    assert out_f32.shape == (N, C_out, 2 * H, 2 * W), out_f32.shape
    np.testing.assert_allclose(np.asarray(out_f32), np.asarray(ref),
                               rtol=1e-5, atol=1e-5)

    # 2) bf16 performance path (default): bf16 streams, f32 accumulation.
    out_bf16 = jax.block_until_ready(
        up_conv(x, w_hwio, conv_bias, gamma, beta, run_mean, run_var))
    assert out_bf16.shape == (N, C_out, 2 * H, 2 * W), out_bf16.shape
    np.testing.assert_allclose(np.asarray(out_bf16.astype(jnp.float32)),
                               np.asarray(ref), rtol=5e-2, atol=5e-2)

    print("KERNEL_OK")
</pallas_src>

<mosaic_0001>
module attributes {stable_mosaic.version = 11 : i64} {
  func.func @_upconv_taps_kernel(%arg0: i32, %arg1: i32, %arg2: memref<1x18x18x4xf32, #tpu.memory_space<vmem>>, %arg3: memref<9x4x128xf32, #tpu.memory_space<vmem>>, %arg4: memref<1x128xf32, #tpu.memory_space<vmem>>, %arg5: memref<1x256x128xf32, #tpu.memory_space<vmem>>) attributes {dimension_semantics = [#tpu.dimension_semantics<parallel>, #tpu.dimension_semantics<arbitrary>], iteration_bounds = array<i64: 2, 1>, scalar_prefetch = 0 : i64, scratch_operands = 0 : i64, tpu.core_type = #tpu.core_type<tc>, window_params = [{transform_indices = @transform_0, window_bounds = array<i64: 1, 18, 18, 4>}, {pipeline_mode = #tpu.pipeline_mode<synchronous>, transform_indices = @transform_1, window_bounds = array<i64: 9, 4, 128>}, {pipeline_mode = #tpu.pipeline_mode<synchronous>, transform_indices = @transform_2, window_bounds = array<i64: 1, 128>}, {transform_indices = @transform_3, window_bounds = array<i64: 1, 256, 128>}]} {
    %c16_i32 = arith.constant 16 : i32
    %0 = arith.muli %arg1, %c16_i32 : i32
    %1 = tpu.assume_multiple %0, 8 : i32
    %c0 = arith.constant 0 : index
    %2 = arith.index_cast %1 : i32 to index
    %c0_0 = arith.constant 0 : index
    %c0_1 = arith.constant 0 : index
    %3 = vector.load %arg2[%c0, %2, %c0_0, %c0_1] : memref<1x18x18x4xf32, #tpu.memory_space<vmem>>, vector<1x18x18x4xf32>
    %4 = vector.shape_cast %3 : vector<1x18x18x4xf32> to vector<18x18x4xf32>
    %cst = arith.constant 0.000000e+00 : f32
    %5 = vector.broadcast %cst : f32 to vector<256x128xf32>
    %6 = vector.extract_strided_slice %4 {offsets = [0, 0, 0], sizes = [16, 16, 4], strides = [1, 1, 1]} : vector<18x18x4xf32> to vector<16x16x4xf32>
    %7 = vector.shape_cast %6 : vector<16x16x4xf32> to vector<256x4xf32>
    %c0_2 = arith.constant 0 : index
    %c0_3 = arith.constant 0 : index
    %c0_4 = arith.constant 0 : index
    %8 = vector.load %arg3[%c0_2, %c0_3, %c0_4] : memref<9x4x128xf32, #tpu.memory_space<vmem>>, vector<1x4x128xf32>
    %9 = vector.shape_cast %8 : vector<1x4x128xf32> to vector<4x128xf32>
    %cst_5 = arith.constant dense<0.000000e+00> : vector<256x128xf32>
    %10 = tpu.matmul %7, %9, %cst_5 {dimension_numbers = #tpu.dot_dimension_numbers<[1], [0], [0], [1], [0, 0, 1, 1], [], []>} : vector<256x4xf32>, vector<4x128xf32>, vector<256x128xf32> -> vector<256x128xf32>
    %11 = arith.addf %5, %10 : vector<256x128xf32>
    %12 = vector.extract_strided_slice %4 {offsets = [0, 1, 0], sizes = [16, 16, 4], strides = [1, 1, 1]} : vector<18x18x4xf32> to vector<16x16x4xf32>
    %13 = vector.shape_cast %12 : vector<16x16x4xf32> to vector<256x4xf32>
    %c1 = arith.constant 1 : index
    %c0_6 = arith.constant 0 : index
    %c0_7 = arith.constant 0 : index
    %14 = vector.load %arg3[%c1, %c0_6, %c0_7] : memref<9x4x128xf32, #tpu.memory_space<vmem>>, vector<1x4x128xf32>
    %15 = vector.shape_cast %14 : vector<1x4x128xf32> to vector<4x128xf32>
    %cst_8 = arith.constant dense<0.000000e+00> : vector<256x128xf32>
    %16 = tpu.matmul %13, %15, %cst_8 {dimension_numbers = #tpu.dot_dimension_numbers<[1], [0], [0], [1], [0, 0, 1, 1], [], []>} : vector<256x4xf32>, vector<4x128xf32>, vector<256x128xf32> -> vector<256x128xf32>
    %17 = arith.addf %11, %16 : vector<256x128xf32>
    %18 = vector.extract_strided_slice %4 {offsets = [0, 2, 0], sizes = [16, 16, 4], strides = [1, 1, 1]} : vector<18x18x4xf32> to vector<16x16x4xf32>
    %19 = vector.shape_cast %18 : vector<16x16x4xf32> to vector<256x4xf32>
    %c2 = arith.constant 2 : index
    %c0_9 = arith.constant 0 : index
    %c0_10 = arith.constant 0 : index
    %20 = vector.load %arg3[%c2, %c0_9, %c0_10] : memref<9x4x128xf32, #tpu.memory_space<vmem>>, vector<1x4x128xf32>
    %21 = vector.shape_cast %20 : vector<1x4x128xf32> to vector<4x128xf32>
    %cst_11 = arith.constant dense<0.000000e+00> : vector<256x128xf32>
    %22 = tpu.matmul %19, %21, %cst_11 {dimension_numbers = #tpu.dot_dimension_numbers<[1], [0], [0], [1], [0, 0, 1, 1], [], []>} : vector<256x4xf32>, vector<4x128xf32>, vector<256x128xf32> -> vector<256x128xf32>
    %23 = arith.addf %17, %22 : vector<256x128xf32>
    %24 = vector.extract_strided_slice %4 {offsets = [1, 0, 0], sizes = [16, 16, 4], strides = [1, 1, 1]} : vector<18x18x4xf32> to vector<16x16x4xf32>
    %25 = vector.shape_cast %24 : vector<16x16x4xf32> to vector<256x4xf32>
    %c3 = arith.constant 3 : index
    %c0_12 = arith.constant 0 : index
    %c0_13 = arith.constant 0 : index
    %26 = vector.load %arg3[%c3, %c0_12, %c0_13] : memref<9x4x128xf32, #tpu.memory_space<vmem>>, vector<1x4x128xf32>
    %27 = vector.shape_cast %26 : vector<1x4x128xf32> to vector<4x128xf32>
    %cst_14 = arith.constant dense<0.000000e+00> : vector<256x128xf32>
    %28 = tpu.matmul %25, %27, %cst_14 {dimension_numbers = #tpu.dot_dimension_numbers<[1], [0], [0], [1], [0, 0, 1, 1], [], []>} : vector<256x4xf32>, vector<4x128xf32>, vector<256x128xf32> -> vector<256x128xf32>
    %29 = arith.addf %23, %28 : vector<256x128xf32>
    %30 = vector.extract_strided_slice %4 {offsets = [1, 1, 0], sizes = [16, 16, 4], strides = [1, 1, 1]} : vector<18x18x4xf32> to vector<16x16x4xf32>
    %31 = vector.shape_cast %30 : vector<16x16x4xf32> to vector<256x4xf32>
    %c4 = arith.constant 4 : index
    %c0_15 = arith.constant 0 : index
    %c0_16 = arith.constant 0 : index
    %32 = vector.load %arg3[%c4, %c0_15, %c0_16] : memref<9x4x128xf32, #tpu.memory_space<vmem>>, vector<1x4x128xf32>
    %33 = vector.shape_cast %32 : vector<1x4x128xf32> to vector<4x128xf32>
    %cst_17 = arith.constant dense<0.000000e+00> : vector<256x128xf32>
    %34 = tpu.matmul %31, %33, %cst_17 {dimension_numbers = #tpu.dot_dimension_numbers<[1], [0], [0], [1], [0, 0, 1, 1], [], []>} : vector<256x4xf32>, vector<4x128xf32>, vector<256x128xf32> -> vector<256x128xf32>
    %35 = arith.addf %29, %34 : vector<256x128xf32>
    %36 = vector.extract_strided_slice %4 {offsets = [1, 2, 0], sizes = [16, 16, 4], strides = [1, 1, 1]} : vector<18x18x4xf32> to vector<16x16x4xf32>
    %37 = vector.shape_cast %36 : vector<16x16x4xf32> to vector<256x4xf32>
    %c5 = arith.constant 5 : index
    %c0_18 = arith.constant 0 : index
    %c0_19 = arith.constant 0 : index
    %38 = vector.load %arg3[%c5, %c0_18, %c0_19] : memref<9x4x128xf32, #tpu.memory_space<vmem>>, vector<1x4x128xf32>
    %39 = vector.shape_cast %38 : vector<1x4x128xf32> to vector<4x128xf32>
    %cst_20 = arith.constant dense<0.000000e+00> : vector<256x128xf32>
    %40 = tpu.matmul %37, %39, %cst_20 {dimension_numbers = #tpu.dot_dimension_numbers<[1], [0], [0], [1], [0, 0, 1, 1], [], []>} : vector<256x4xf32>, vector<4x128xf32>, vector<256x128xf32> -> vector<256x128xf32>
    %41 = arith.addf %35, %40 : vector<256x128xf32>
    %42 = vector.extract_strided_slice %4 {offsets = [2, 0, 0], sizes = [16, 16, 4], strides = [1, 1, 1]} : vector<18x18x4xf32> to vector<16x16x4xf32>
    %43 = vector.shape_cast %42 : vector<16x16x4xf32> to vector<256x4xf32>
    %c6 = arith.constant 6 : index
    %c0_21 = arith.constant 0 : index
    %c0_22 = arith.constant 0 : index
    %44 = vector.load %arg3[%c6, %c0_21, %c0_22] : memref<9x4x128xf32, #tpu.memory_space<vmem>>, vector<1x4x128xf32>
    %45 = vector.shape_cast %44 : vector<1x4x128xf32> to vector<4x128xf32>
    %cst_23 = arith.constant dense<0.000000e+00> : vector<256x128xf32>
    %46 = tpu.matmul %43, %45, %cst_23 {dimension_numbers = #tpu.dot_dimension_numbers<[1], [0], [0], [1], [0, 0, 1, 1], [], []>} : vector<256x4xf32>, vector<4x128xf32>, vector<256x128xf32> -> vector<256x128xf32>
    %47 = arith.addf %41, %46 : vector<256x128xf32>
    %48 = vector.extract_strided_slice %4 {offsets = [2, 1, 0], sizes = [16, 16, 4], strides = [1, 1, 1]} : vector<18x18x4xf32> to vector<16x16x4xf32>
    %49 = vector.shape_cast %48 : vector<16x16x4xf32> to vector<256x4xf32>
    %c7 = arith.constant 7 : index
    %c0_24 = arith.constant 0 : index
    %c0_25 = arith.constant 0 : index
    %50 = vector.load %arg3[%c7, %c0_24, %c0_25] : memref<9x4x128xf32, #tpu.memory_space<vmem>>, vector<1x4x128xf32>
    %51 = vector.shape_cast %50 : vector<1x4x128xf32> to vector<4x128xf32>
    %cst_26 = arith.constant dense<0.000000e+00> : vector<256x128xf32>
    %52 = tpu.matmul %49, %51, %cst_26 {dimension_numbers = #tpu.dot_dimension_numbers<[1], [0], [0], [1], [0, 0, 1, 1], [], []>} : vector<256x4xf32>, vector<4x128xf32>, vector<256x128xf32> -> vector<256x128xf32>
    %53 = arith.addf %47, %52 : vector<256x128xf32>
    %54 = vector.extract_strided_slice %4 {offsets = [2, 2, 0], sizes = [16, 16, 4], strides = [1, 1, 1]} : vector<18x18x4xf32> to vector<16x16x4xf32>
    %55 = vector.shape_cast %54 : vector<16x16x4xf32> to vector<256x4xf32>
    %c8 = arith.constant 8 : index
    %c0_27 = arith.constant 0 : index
    %c0_28 = arith.constant 0 : index
    %56 = vector.load %arg3[%c8, %c0_27, %c0_28] : memref<9x4x128xf32, #tpu.memory_space<vmem>>, vector<1x4x128xf32>
    %57 = vector.shape_cast %56 : vector<1x4x128xf32> to vector<4x128xf32>
    %cst_29 = arith.constant dense<0.000000e+00> : vector<256x128xf32>
    %58 = tpu.matmul %55, %57, %cst_29 {dimension_numbers = #tpu.dot_dimension_numbers<[1], [0], [0], [1], [0, 0, 1, 1], [], []>} : vector<256x4xf32>, vector<4x128xf32>, vector<256x128xf32> -> vector<256x128xf32>
    %59 = arith.addf %53, %58 : vector<256x128xf32>
    %c0_30 = arith.constant 0 : index
    %c0_31 = arith.constant 0 : index
    %60 = vector.load %arg4[%c0_30, %c0_31] : memref<1x128xf32, #tpu.memory_space<vmem>>, vector<1x128xf32>
    %61 = vector.broadcast %60 : vector<1x128xf32> to vector<256x128xf32>
    %62 = arith.addf %59, %61 : vector<256x128xf32>
    %cst_32 = arith.constant 0.000000e+00 : f32
    %63 = vector.broadcast %cst_32 : f32 to vector<256x128xf32>
    %64 = arith.maximumf %62, %63 : vector<256x128xf32>
    %c0_33 = arith.constant 0 : index
    %c0_34 = arith.constant 0 : index
    %c0_35 = arith.constant 0 : index
    %65 = vector.load %arg5[%c0_33, %c0_34, %c0_35] : memref<1x256x128xf32, #tpu.memory_space<vmem>>, vector<1x256x128xf32>
    %66 = vector.shape_cast %65 : vector<1x256x128xf32> to vector<256x128xf32>
    %67 = vector.shape_cast %64 : vector<256x128xf32> to vector<1x256x128xf32>
    tpu.vector_store %arg5[%c0_33, %c0_34, %c0_35], %67 {strides = array<i32>} : memref<1x256x128xf32, #tpu.memory_space<vmem>>, vector<1x256x128xf32>,
    return
  }
  func.func @transform_0(%arg0: i32, %arg1: i32) -> (i32, i32, i32, i32) {
    %c0_i32 = arith.constant 0 : i32
    %c0_i32_0 = arith.constant 0 : i32
    %c0_i32_1 = arith.constant 0 : i32
    %c0_i32_2 = arith.constant 0 : i32
    return %arg0, %c0_i32, %c0_i32_0, %c0_i32_1 : i32, i32, i32, i32
  }
  func.func @transform_1(%arg0: i32, %arg1: i32) -> (i32, i32, i32) {
    %c0_i32 = arith.constant 0 : i32
    %c0_i32_0 = arith.constant 0 : i32
    %c0_i32_1 = arith.constant 0 : i32
    %c0_i32_2 = arith.constant 0 : i32
    return %c0_i32, %c0_i32_0, %c0_i32_1 : i32, i32, i32
  }
  func.func @transform_2(%arg0: i32, %arg1: i32) -> (i32, i32) {
    %c0_i32 = arith.constant 0 : i32
    %c0_i32_0 = arith.constant 0 : i32
    %c0_i32_1 = arith.constant 0 : i32
    return %c0_i32, %c0_i32_0 : i32, i32
  }
  func.func @transform_3(%arg0: i32, %arg1: i32) -> (i32, i32, i32) {
    %c0_i32 = arith.constant 0 : i32
    %c0_i32_0 = arith.constant 0 : i32
    return %arg0, %arg1, %c0_i32 : i32, i32, i32
  }
}

</mosaic_0001>

<bundles_post_ra>
// kernel: tile.8
= control target key start
LH: loop header
LB: loop body
LE: loop exit
PB: predicated region body
PF: predicated region fallthrough
CT: control target
= control target key end

     0   :  { %s22_s0 = inlined_call_operand.vmem [shape: f32[32], index: 0, kind: input, shape index: {}]   ;;  %s23_s1 = inlined_call_operand.vmem [shape: f32[4,32], index: 1, kind: output, shape index: {}]  }
   0x1   :  { %v4_v0 = vld [vmem:[%s22_s0] ss:$0 sm:$0xff] }
   0x2   :  { %5 = vst [vmem:[%s23_s1] sm:$0xf] %v4_v0 }

// kernel: tile.9
= control target key start
LH: loop header
LB: loop body
LE: loop exit
PB: predicated region body
PF: predicated region fallthrough
CT: control target
= control target key end

     0   :  { %vm7_vm0 = vcmask 261120   ;;  %s37_s8 = smov 32   ;;  %s38_s9 = smov 64   ;;  %vm13_vm1 = vcmask 1048320   ;;  %vm19_vm2 = vcmask 785920   ;;  %vm25_vm3 = vcmask 523520   ;;  %s55_s0 = inlined_call_operand.vmem [shape: f32[4,32], index: 0, kind: input, shape index: {}]   ;;  %s56_s1 = inlined_call_operand.vmem [shape: f32[1,128], index: 1, kind: output, shape index: {}]  }
   0x1   :  { %v4_v0 = vld [vmem:[%s55_s0] sm:$0xf]  ;;  %s36_s0 = smov 96  }
   0x2   :  { %5 = vst [vmem:[#allocation1] sm:$0xf] %v4_v0 }
   0x9   :  { %v10_v1 = vld [vmem:[#allocation1 + $0x3] sm:$0x1]   ;;  %v22_v2 = vld [vmem:[#allocation1 + $0x1] sm:$0x1]   ;;  %v6_v3 = vld [vmem:[#allocation1] sm:$0x1]  }
   0xa   :  { %11 = vrot.lane.b32.xlu0 %v10_v1, %s36_s0  ;;  %23 = vrot.lane.b32.xlu1 %v22_v2, %s37_s8  ;;  %v16_v4 = vld [vmem:[#allocation1 + $0x2] sm:$0x1]   ;;  %8 = vst.msk [vmem:[#allocation0] sm:$0x1] %vm7_vm0, %v6_v3  }
   0xe   :  { %17 = vrot.lane.b32.xlu0 %v16_v4, %s38_s9 }
  0x7c   :  { %v12_v5 = vpop.permute.xlu0 %11   ;;  %v24_v6 = vpop.permute.xlu1 %23  }
  0x7d   :  { %14 = vst.msk [vmem:[#allocation0] sm:$0x1] %vm13_vm1, %v12_v5  }
  0x80   :  { %v18_v7 = vpop.permute.xlu0 %17  }
  0x81   :  { %20 = vst.msk [vmem:[#allocation0] sm:$0x1] %vm19_vm2, %v18_v7  }
  0x82   :  { %26 = vst.msk [vmem:[#allocation0] sm:$0x1] %vm25_vm3, %v24_v6  }
  0x89   :  { %v30_v8 = vld [vmem:[#allocation0] sm:$0x1] }
  0x8a   :  { %32 = vst [vmem:[%s56_s1] sm:$0x1] %v30_v8 }

// kernel: up_conv_pallas.1
= control target key start
LH: loop header
LB: loop body
LE: loop exit
PB: predicated region body
PF: predicated region fallthrough
CT: control target
= control target key end

     0   :  { %s4575_s12 = smov 0   ;;  %s4577_s13 = smov 0   ;;  %s5800_s0 = inlined_call_operand.vmem [shape: f32[2,18,18,4], index: 0, kind: input, shape index: {}]   ;;  %s5801_s1 = inlined_call_operand.vmem [shape: f32[9,4,128], index: 1, kind: input, shape index: {}]   ;;  %s5802_s2 = inlined_call_operand.vmem [shape: f32[1,128], index: 2, kind: input, shape index: {}]   ;;  %s5803_s3 = inlined_call_operand.vmem [shape: f32[2,256,128], index: 3, kind: output, shape index: {}]  }
   0x1   :  { %s4579_s14 = smov 0  }
   0x2 LB: > { %s25_s15 = sadd.s32 1, %s4549_s13  ;;  %p3188_p0 = scmp.ge.s32.totalorder %s4553_s14, 1  ;;  %s4553_s14 = sphi %s4579_s14, %s13_s14   ;;  %s4549_s13 = sphi %s4577_s13, %s5979_s13   ;;  %s4545_s12 = sphi %s4575_s12, %s5978_s12  }
   0x3   : > { %p27_p1 = scmp.ge.s32.totalorder %s25_s15, 2  ;;  %p151_p2 = scmp.lt.s32.totalorder %s4553_s14, 3 }
   0x5   : > { %s5981_s15 = smov (%p27_p1, %s25_s15), 0  ;;  %p152_p3 = pnand %p3188_p0, %p151_p2 }
   0x7   : > { %155 = sbr.rel (%p152_p3) target bundleno = 530 (0x212), region = 32 }
   0xe   : > { %v3192_v0 = vld [vmem:[%s5801_s1 + $0x4] sm:$0xf]  ;;  %vm448_vm0 = vcmask 1043456   ;;  %v4599_v1 = vld [vmem:[%s5801_s1 + $0x10] sm:$0xf]  ;;  %p179_p4 = scmp.lt.s32.totalorder %s4545_s12, 1 }
   0xf   : > { %3798 = vmatprep.subr.msk.mxu1 %vm448_vm0, %v3192_v0  ;;  %3998 = vmatprep.subr.msk.mxu0 %vm448_vm0, %v4599_v1  ;;  %v251_v2 = vld [vmem:[%s5801_s1] sm:$0xf]  ;;  %v3361_v3 = vld [vmem:[%s5801_s1 + $0x14] sm:$0xf]  ;;  %vm300_vm1 = vcmask 1046528   ;;  %vm383_vm2 = vcmask 31744  }
  0x10   : > { %3799 = vmatpush3.msk.msra.mxu1 %vm448_vm0, %v3192_v0  ;;  %3999 = vmatpush3.msk.msra.mxu0 %vm448_vm0, %v4599_v1  ;;  %s5983_s12 = smov (!%p179_p4, %s4545_s12), 1  ;;  %v4686_v33 = vld [vmem:[%s5801_s1 + $0x18] sm:$0xf]  ;;  %v4696_v35 = vld [vmem:[%s5801_s1 + $0x8] sm:$0xf]  ;;  %vm969_vm3 = vcmask 1045504  }
  0x11   : > { %3848 = vmatprep.subr.msk.mxu1 %vm448_vm0, %v251_v2  ;;  %4048 = vmatprep.subr.msk.mxu0 %vm448_vm0, %v3361_v3  ;;  %s4506_s24 = smul.u32 432, %s5983_s12  ;;  %s3500_s17 = sshll.u32 %s5983_s12, 8 }
  0x12   : > { %s5722_s20 = scalar_lea.vmem %s5803_s3, %s3500_s17 }
  0x13   : > { %s4621_s27 = scalar_lea.vmem %s5800_s0, %s4506_s24 }
  0x14   : > { %v4624_v4 = vld [vmem:[%s4621_s27] sm:$0xff]  ;;  %v4627_v5 = vld [vmem:[%s4621_s27 + $0x8] sm:$0xff]  ;;  %v4630_v6 = vld [vmem:[%s4621_s27 + $0x18] sm:$0xff] }
  0x15   : > { %5877 = vst [vmem:[#allocation2_spill] sm:$0xff] %v4630_v6  ;;  %v301_v7 = vrot.slane %v4624_v4, 1  ;;  %v302_v8 = vrot.slane %v4627_v5, 1  ;;  %v4635_v9 = vld [vmem:[%s4621_s27 + $0x20] sm:$0xff]  ;;  %v306_v10 = vrot.slane %v4630_v6, 1  ;;  %v4647_v15 = vld [vmem:[%s4621_s27 + $0x30] sm:$0xff] }
  0x16   : > { %5878 = vst [vmem:[#allocation3_spill] sm:$0xff] %v4635_v9  ;;  %v4639_v11 = vld [vmem:[%s4621_s27 + $0x10] sm:$0x3]  ;;  %v307_v12 = vrot.slane %v4635_v9, 1  ;;  %v4644_v14 = vld [vmem:[%s4621_s27 + $0x28] sm:$0x3] }
  0x17   : > { %v304_v13 = vrot.slane %v4639_v11, 1  ;;  %v303_v16 = vsel %vm300_vm1, %v301_v7, %v302_v8  ;;  %v309_v17 = vrot.slane %v4644_v14, 1  ;;  %v4652_v18 = vld [vmem:[%s4621_s27 + $0x38] sm:$0xff]  ;;  %v311_v19 = vrot.slane %v4647_v15, 1  ;;  %v4656_v20 = vld [vmem:[%s4621_s27 + $0x40] sm:$0x3] }
  0x18   : > { %3800 = vmatprep.mubr.msk.f32.mxu1 %vm383_vm2, %v303_v16  ;;  %v308_v21 = vsel %vm300_vm1, %v306_v10, %v307_v12  ;;  %v312_v23 = vrot.slane %v4652_v18, 1  ;;  %v314_v24 = vrot.slane %v4656_v20, 1  ;;  %v4664_v25 = vld [vmem:[%s4621_s27 + $0x48] sm:$0xff]  ;;  %v4667_v26 = vld [vmem:[%s4621_s27 + $0x50] sm:$0xff]  ;;  %v4670_v27 = vld [vmem:[%s4621_s27 + $0x58] sm:$0x3] }
  0x19   : > { %v305_v22 = vsel %vm300_vm1, %v302_v8, %v304_v13  ;;  %4000 = vmatprep.mubr.msk.f32.mxu0 %vm383_vm2, %v308_v21  ;;  %v310_v28 = vsel %vm300_vm1, %v307_v12, %v309_v17  ;;  %v316_v29 = vrot.slane %v4664_v25, 1  ;;  %v317_v30 = vrot.slane %v4667_v26, 1  ;;  %v4678_v31 = vld [vmem:[%s4621_s27 + $0x60] sm:$0xff]  ;;  %v4681_v32 = vld [vmem:[%s4621_s27 + $0x68] sm:$0xff]  ;;  %v4712_v41 = vld [vmem:[%s4621_s27 + $0x70] sm:$0x3] }
  0x1a   : > { %3801 = vmatmul.mubr.msk.f32.vlgmr.msra.gmra.mrb[0].mxu1 %vm383_vm2, %v305_v22  ;;  %4001 = vmatmul.mubr.msk.f32.vlgmr.msra.gmra.mrb[0].mxu0 %vm383_vm2, %v310_v28  ;;  %v4691_v34 = vsel %vm300_vm1, %v311_v19, %v312_v23  ;;  %v4701_v36 = vsel %vm300_vm1, %v312_v23, %v314_v24  ;;  %v319_v37 = vrot.slane %v4670_v27, 1  ;;  %v321_v39 = vrot.slane %v4678_v31, 1  ;;  %v4718_v42 = vld [vmem:[%s4621_s27 + $0x78] sm:$0xff]  ;;  %v4721_v43 = vld [vmem:[%s4621_s27 + $0x80] sm:$0xff]  ;;  %v4741_v49 = vld [vmem:[%s4621_s27 + $0x88] sm:$0x3] }
  0x1b   : > { %3849 = vmatpush3.msk.msra.mxu1 %vm448_vm0, %v251_v2  ;;  %5879 = vst [vmem:[#allocation4_spill] sm:$0xff] %v4691_v34  ;;  %4049 = vmatpush3.msk.msra.mxu0 %vm448_vm0, %v3361_v3  ;;  %5880 = vst [vmem:[#allocation5_spill] sm:$0xff] %v4701_v36  ;;  %v4707_v38 = vsel %vm300_vm1, %v316_v29, %v317_v30  ;;  %v322_v40 = vrot.slane %v4681_v32, 1  ;;  %v324_v45 = vrot.slane %v4712_v41, 1  ;;  %v326_v47 = vrot.slane %v4718_v42, 1  ;;  %v4746_v50 = vld [vmem:[%s4621_s27 + $0x90] sm:$0xff] }
  0x1c   : > { %3803 = vmatprep.mubr.msk.f32.mxu1 %vm383_vm2, %v308_v21  ;;  %4003 = vmatprep.mubr.msk.f32.mxu0 %vm383_vm2, %v4691_v34  ;;  %5881 = vst [vmem:[#allocation6_spill] sm:$0xff] %v4707_v38  ;;  %v4732_v44 = vsel %vm300_vm1, %v317_v30, %v319_v37  ;;  %v327_v48 = vrot.slane %v4721_v43, 1  ;;  %v4749_v51 = vld [vmem:[%s4621_s27 + $0x98] sm:$0xff]  ;;  %v329_v53 = vrot.slane %v4741_v49, 1  ;;  %v331_v55 = vrot.slane %v4746_v50, 1  ;;  %v4772_v58 = vld [vmem:[%s4621_s27 + $0xa8] sm:$0xff] }
  0x1d   : > { %4098 = vmatprep.subr.msk.mxu0 %vm448_vm0, %v4686_v33  ;;  %3898 = vmatprep.subr.msk.mxu1 %vm448_vm0, %v4696_v35  ;;  %5882 = vst [vmem:[#allocation7_spill] sm:$0xff] %v4732_v44  ;;  %v4736_v46 = vsel %vm300_vm1, %v321_v39, %v322_v40  ;;  %v4758_v52 = vsel %vm300_vm1, %v322_v40, %v324_v45  ;;  %v332_v56 = vrot.slane %v4749_v51, 1  ;;  %v4767_v57 = vld [vmem:[%s4621_s27 + $0xa0] sm:$0x3]  ;;  %v4775_v59 = vld [vmem:[%s4621_s27 + $0xb0] sm:$0xff]  ;;  %v336_v63 = vrot.slane %v4772_v58, 1 }
  0x1e   : > { %3804 = vmatmul.mubr.msk.f32.gmra.mrb[2].mxu1 %vm383_vm2, %v310_v28  ;;  %4004 = vmatmul.mubr.msk.f32.gmra.mrb[2].mxu0 %vm383_vm2, %v4701_v36  ;;  %5883 = vst [vmem:[#allocation8_spill] sm:$0xff] %v4736_v46  ;;  %5884 = vst [vmem:[#allocation9_spill] sm:$0xff] %v4758_v52  ;;  %v4762_v54 = vsel %vm300_vm1, %v326_v47, %v327_v48  ;;  %v4784_v60 = vsel %vm300_vm1, %v327_v48, %v329_v53  ;;  %v334_v61 = vrot.slane %v4767_v57, 1  ;;  %v4793_v2 = vld [vmem:[%s4621_s27 + $0xb8] sm:$0x3]  ;;  %v4798_v3 = vld [vmem:[%s4621_s27 + $0xc0] sm:$0xff] }
  0x1f   : > { %3806 = vmatprep.mubr.msk.f32.mxu1 %vm383_vm2, %v4691_v34  ;;  %4006 = vmatprep.mubr.msk.f32.mxu0 %vm383_vm2, %v4707_v38  ;;  %5885 = vst [vmem:[#allocation10_spill] sm:$0xff] %v4762_v54  ;;  %5886 = vst [vmem:[#allocation11_spill] sm:$0xff] %v4784_v60  ;;  %v4788_v62 = vsel %vm300_vm1, %v331_v55, %v332_v56  ;;  %v337_v0 = vrot.slane %v4775_v59, 1  ;;  %v4801_v7 = vld [vmem:[%s4621_s27 + $0xc8] sm:$0xff]  ;;  %v339_v10 = vrot.slane %v4793_v2, 1  ;;  %v341_v13 = vrot.slane %v4798_v3, 1 }
  0x20   : > { %5887 = vst [vmem:[#allocation12_spill] sm:$0xff] %v4788_v62  ;;  %v4810_v8 = vsel %vm300_vm1, %v332_v56, %v334_v61  ;;  %v342_v16 = vrot.slane %v4801_v7, 1  ;;  %v4819_v17 = vld [vmem:[%s4621_s27 + $0xd0] sm:$0x3]  ;;  %v975_v23 = vrot.slane %v4630_v6, 2  ;;  %v976_v24 = vrot.slane %v4635_v9, 2 }
  0x21   : > { %5888 = vst [vmem:[#allocation13_spill] sm:$0xff] %v4810_v8  ;;  %v4814_v12 = vsel %vm300_vm1, %v336_v63, %v337_v0  ;;  %v4830_v19 = vsel %vm300_vm1, %v337_v0, %v339_v10  ;;  %v344_v21 = vrot.slane %v4819_v17, 1  ;;  %v4839_v28 = vld [vmem:[%s4621_s27 + $0xd8] sm:$0xff]  ;;  %v4842_v29 = vld [vmem:[%s4621_s27 + $0xe0] sm:$0xff]  ;;  %v978_v30 = vrot.slane %v4644_v14, 2  ;;  %v4867_v53 = vld [vmem:[%s4621_s27 + $0xf0] sm:$0xff] }
  0x22   : > { %3807 = vmatmul.mubr.msk.f32.gmra.mrb[4].mxu1 %vm383_vm2, %v4701_v36  ;;  %4007 = vmatmul.mubr.msk.f32.gmra.mrb[4].mxu0 %vm383_vm2, %v4732_v44  ;;  %5889 = vst [vmem:[#allocation14_spill] sm:$0xff] %v4814_v12  ;;  %5890 = vst [vmem:[#allocation15_spill] sm:$0xff] %v4830_v19  ;;  %v4834_v22 = vsel %vm300_vm1, %v341_v13, %v342_v16  ;;  %v346_v39 = vrot.slane %v4839_v28, 1  ;;  %v347_v40 = vrot.slane %v4842_v29, 1  ;;  %v4859_v45 = vld [vmem:[%s4621_s27 + $0xe8] sm:$0x3] }
  0x23   : > { %3809 = vmatprep.mubr.msk.f32.mxu1 %vm383_vm2, %v4707_v38  ;;  %4009 = vmatprep.mubr.msk.f32.mxu0 %vm383_vm2, %v4736_v46  ;;  %5891 = vst [vmem:[#allocation16_spill] sm:$0xff] %v4834_v22  ;;  %v4854_v37 = vsel %vm300_vm1, %v342_v16, %v344_v21  ;;  %v4862_v47 = vsel %vm969_vm3, %v975_v23, %v976_v24  ;;  %v980_v48 = vrot.slane %v4647_v15, 2  ;;  %v981_v14 = vrot.slane %v4652_v18, 2  ;;  %v4870_v55 = vld [vmem:[%s4621_s27 + $0xf8] sm:$0xff]  ;;  %v4891_v16 = vld [vmem:[%s4621_s27 + $0x100] sm:$0x3] }
  0x24   : > { %5892 = vst [vmem:[#allocation17_spill] sm:$0xff] %v4854_v37  ;;  %v349_v56 = vrot.slane %v4859_v45, 1  ;;  %v983_v61 = vrot.slane %v4656_v20, 2  ;;  %v4883_v63 = vsel %vm969_vm3, %v976_v24, %v978_v30  ;;  %v4886_v0 = vsel %vm300_vm1, %v346_v39, %v347_v40  ;;  %v4902_v24 = vld [vmem:[%s4621_s27 + $0x110] sm:$0xff]  ;;  %v4909_v30 = vld [vmem:[%s5801_s1 + $0x1c] sm:$0xf] }
  0x25   : > { %5893 = vst [vmem:[#allocation18_spill] sm:$0xff] %v4886_v0  ;;  %v351_v10 = vrot.slane %v4867_v53, 1  ;;  %v352_v13 = vrot.slane %v4870_v55, 1  ;;  %v4894_v21 = vsel %vm969_vm3, %v980_v48, %v981_v14  ;;  %v985_v20 = vrot.slane %v4664_v25, 2  ;;  %v5005_v36 = vld [vmem:[%s4621_s27 + $0x148] sm:$0x3] }
  0x26   : > { %3810 = vmatmul.mubr.msk.f32.gmra.mrb[6].mxu1 %vm383_vm2, %v4732_v44  ;;  %4010 = vmatmul.mubr.msk.f32.gmra.mrb[6].mxu0 %vm383_vm2, %v4758_v52  ;;  %v986_v23 = vrot.slane %v4667_v26, 2  ;;  %v4916_v39 = vsel %vm300_vm1, %v347_v40, %v349_v56  ;;  %v4919_v48 = vsel %vm969_vm3, %v981_v14, %v983_v61  ;;  %v357_v40 = vrot.slane %v4902_v24, 1  ;;  %v4933_v56 = vld [vmem:[%s4621_s27 + $0x118] sm:$0x3] }
  0x27   : > { %3812 = vmatprep.mubr.msk.f32.mxu1 %vm383_vm2, %v4736_v46  ;;  %4012 = vmatprep.mubr.msk.f32.mxu0 %vm383_vm2, %v4762_v54  ;;  %5894 = vst [vmem:[#allocation19_spill] sm:$0xff] %v4916_v39  ;;  %5895 = vst [vmem:[#allocation20_spill] sm:$0xff] %v4919_v48  ;;  %v990_v61 = vrot.slane %v4678_v31, 2  ;;  %v4978_v46 = vld [vmem:[%s4621_s27 + $0x138] sm:$0xff]  ;;  %v998_v44 = vrot.slane %v4741_v49, 2  ;;  %v1003_v34 = vrot.slane %v4767_v57, 2 }
  0x28   : > { %v4936_v14 = vsel %vm969_vm3, %v985_v20, %v986_v23  ;;  %v359_v20 = vrot.slane %v4933_v56, 1  ;;  %v366_v38 = vrot.slane %v4978_v46, 1  ;;  %v1005_v57 = vrot.slane %v4772_v58, 2 }
  0x29   : > { %5897 = vst [vmem:[#allocation22_spill] sm:$0xff] %v4936_v14 }
  0x2a   : > { %3813 = vmatmul.mubr.msk.f32.gmra.mrb[8].mxu1 %vm383_vm2, %v4758_v52  ;;  %4013 = vmatmul.mubr.msk.f32.gmra.mrb[8].mxu0 %vm383_vm2, %v4784_v60  ;;  %v4970_v52 = vld [vmem:[%s4621_s27 + $0x130] sm:$0x3] }
  0x2b   : > { %3815 = vmatprep.mubr.msk.f32.mxu1 %vm383_vm2, %v4762_v54  ;;  %4015 = vmatprep.mubr.msk.f32.mxu0 %vm383_vm2, %v4788_v62 }
  0x2e   : > { %3816 = vmatmul.mubr.msk.f32.gmra.mrb[10].mxu1 %vm383_vm2, %v4784_v60  ;;  %4016 = vmatmul.mubr.msk.f32.gmra.mrb[10].mxu0 %vm383_vm2, %v4810_v8 }
  0x2f   : > { %3818 = vmatprep.mubr.msk.f32.mxu1 %vm383_vm2, %v4788_v62  ;;  %4018 = vmatprep.mubr.msk.f32.mxu0 %vm383_vm2, %v4814_v12  ;;  %v993_v62 = vrot.slane %v4712_v41, 2  ;;  %v995_v41 = vrot.slane %v4718_v42, 2 }
  0x32   : > { %3819 = vmatmul.mubr.msk.f32.gmra.mrb[12].mxu1 %vm383_vm2, %v4810_v8  ;;  %4019 = vmatmul.mubr.msk.f32.gmra.mrb[12].mxu0 %vm383_vm2, %v4830_v19  ;;  %v4941_v8 = vld [vmem:[%s4621_s27 + $0x120] sm:$0xff] }
  0x33   : > { %3821 = vmatprep.mubr.msk.f32.mxu1 %vm383_vm2, %v4814_v12  ;;  %4021 = vmatprep.mubr.msk.f32.mxu0 %vm383_vm2, %v4834_v22  ;;  %v988_v12 = vrot.slane %v4670_v27, 2  ;;  %v361_v54 = vrot.slane %v4941_v8, 1 }
  0x35   : > { %v4962_v60 = vsel %vm969_vm3, %v986_v23, %v988_v12  ;;  %v4981_v12 = vld [vmem:[%s4621_s27 + $0x140] sm:$0xff] }
  0x36   : > { %3822 = vmatmul.mubr.msk.f32.gmra.mrb[14].mxu1 %vm383_vm2, %v4830_v19  ;;  %4022 = vmatmul.mubr.msk.f32.gmra.mrb[14].mxu0 %vm383_vm2, %v4854_v37  ;;  %v4927_v19 = vsel %vm300_vm1, %v351_v10, %v352_v13  ;;  %v4944_v10 = vld [vmem:[%s4621_s27 + $0x128] sm:$0xff]  ;;  %5899 = vst [vmem:[#allocation24_spill] sm:$0xff] %v4962_v60 }
  0x37   : > { %3824 = vmatprep.mubr.msk.f32.mxu1 %vm383_vm2, %v4834_v22  ;;  %4050 = vmatprep.mubr.msk.f32.mxu0 %vm383_vm2, %v4862_v47  ;;  %v4899_v22 = vld [vmem:[%s4621_s27 + $0x108] sm:$0xff]  ;;  %5896 = vst [vmem:[#allocation21_spill] sm:$0xff] %v4927_v19 }
  0x3a   : > { %3825 = vmatmul.mubr.msk.f32.gmra.mrb[16].mxu1 %vm383_vm2, %v4854_v37  ;;  %4051 = vmatmul.mubr.msk.f32.vlgmr.msra.gmra.mrb[0].mxu0 %vm383_vm2, %v4883_v63  ;;  %v354_v37 = vrot.slane %v4891_v16, 1 }
  0x3b   : > { %3827 = vmatprep.mubr.msk.f32.mxu1 %vm383_vm2, %v4886_v0  ;;  %4099 = vmatpush3.msk.msra.mxu0 %vm448_vm0, %v4686_v33  ;;  %v356_v0 = vrot.slane %v4899_v22, 1  ;;  %v991_v33 = vrot.slane %v4681_v32, 2 }
  0x3c   : > { %4053 = vmatprep.mubr.msk.f32.mxu0 %vm383_vm2, %v4894_v21  ;;  %4148 = vmatprep.subr.msk.mxu0 %vm448_vm0, %v4909_v30  ;;  %v4955_v27 = vsel %vm300_vm1, %v352_v13, %v354_v37  ;;  %v996_v13 = vrot.slane %v4721_v43, 2 }
  0x3d   : > { %5898 = vst [vmem:[#allocation23_spill] sm:$0xff] %v4955_v27  ;;  %v4973_v37 = vsel %vm969_vm3, %v990_v61, %v991_v33  ;;  %v4993_v23 = vsel %vm969_vm3, %v991_v33, %v993_v62  ;;  %v364_v61 = vrot.slane %v4970_v52, 1  ;;  %v1000_v62 = vrot.slane %v4746_v50, 2 }
  0x3e   : > { %3828 = vmatmul.mubr.msk.f32.gmra.mrb[18].mxu1 %vm383_vm2, %v4916_v39  ;;  %4054 = vmatmul.mubr.msk.f32.gmra.mrb[2].mxu0 %vm383_vm2, %v4919_v48  ;;  %v4965_v39 = vsel %vm300_vm1, %v356_v0, %v357_v40  ;;  %5901 = vst [vmem:[#allocation26_spill] sm:$0xff] %v4973_v37  ;;  %v4990_v0 = vsel %vm300_vm1, %v357_v40, %v359_v20  ;;  %5903 = vst [vmem:[#allocation28_spill] sm:$0xff] %v4993_v23  ;;  %v1001_v33 = vrot.slane %v4749_v51, 2  ;;  %v5013_v20 = vld [vmem:[%s4621_s27 + $0x150] sm:$0xff]  ;;  %v5075_v48 = vld [vmem:[%s4621_s27 + $0x178] sm:$0x3] }
  0x3f   : > { %3830 = vmatprep.mubr.msk.f32.mxu1 %vm383_vm2, %v4927_v19  ;;  %4056 = vmatprep.mubr.msk.f32.mxu0 %vm383_vm2, %v4936_v14  ;;  %5900 = vst [vmem:[#allocation25_spill] sm:$0xff] %v4965_v39  ;;  %v362_v19 = vrot.slane %v4944_v10, 1  ;;  %5902 = vst [vmem:[#allocation27_spill] sm:$0xff] %v4990_v0  ;;  %v5008_v40 = vsel %vm969_vm3, %v995_v41, %v996_v13  ;;  %v369_v41 = vrot.slane %v5005_v36, 1 }
  0x40   : > { %5905 = vst [vmem:[#allocation30_spill] sm:$0xff] %v5008_v40 }
  0x41   : > { %v5025_v49 = vsel %vm300_vm1, %v362_v19, %v364_v61  ;;  %v1006_v61 = vrot.slane %v4775_v59, 2 }
  0x42   : > { %3831 = vmatmul.mubr.msk.f32.gmra.mrb[20].mxu1 %vm383_vm2, %v4955_v27  ;;  %4057 = vmatmul.mubr.msk.f32.gmra.mrb[4].mxu0 %vm383_vm2, %v4962_v60  ;;  %v4999_v27 = vsel %vm300_vm1, %v361_v54, %v362_v19  ;;  %v5016_v54 = vld [vmem:[%s4621_s27 + $0x158] sm:$0xff]  ;;  %5906 = vst [vmem:[#allocation31_spill] sm:$0xff] %v5025_v49  ;;  %v5040_v60 = vld [vmem:[%s4621_s27 + $0x160] sm:$0x3]  ;;  %v5043_v19 = vsel %vm969_vm3, %v1000_v62, %v1001_v33 }
  0x43   : > { %3833 = vmatprep.mubr.msk.f32.mxu1 %vm383_vm2, %v4965_v39  ;;  %4059 = vmatprep.mubr.msk.f32.mxu0 %vm383_vm2, %v4973_v37  ;;  %5904 = vst [vmem:[#allocation29_spill] sm:$0xff] %v4999_v27  ;;  %v367_v39 = vrot.slane %v4981_v12, 1  ;;  %v5032_v37 = vsel %vm969_vm3, %v996_v13, %v998_v44  ;;  %v5051_v44 = vld [vmem:[%s4621_s27 + $0x170] sm:$0xff]  ;;  %v5063_v13 = vsel %vm969_vm3, %v1001_v33, %v1003_v34  ;;  %v374_v62 = vrot.slane %v5040_v60, 1 }
  0x44   : > { %5907 = vst [vmem:[#allocation32_spill] sm:$0xff] %v5032_v37  ;;  %5909 = vst [vmem:[#allocation34_spill] sm:$0xff] %v5051_v44  ;;  %v1010_v34 = vrot.slane %v4798_v3, 2  ;;  %v1011_v33 = vrot.slane %v4801_v7, 2 }
  0x45   : > { %5911 = vst [vmem:[#allocation36_spill] sm:$0xff] %v5063_v13 }
  0x46   : > { %3834 = vmatmul.mubr.msk.f32.gmra.mrb[22].mxu1 %vm383_vm2, %v4990_v0  ;;  %4060 = vmatmul.mubr.msk.f32.gmra.mrb[6].mxu0 %vm383_vm2, %v4993_v23  ;;  %v5035_v0 = vsel %vm300_vm1, %v366_v38, %v367_v39  ;;  %v371_v23 = vrot.slane %v5013_v20, 1  ;;  %v5060_v38 = vsel %vm300_vm1, %v367_v39, %v369_v41  ;;  %v5078_v39 = vsel %vm969_vm3, %v1005_v57, %v1006_v61 }
  0x47   : > { %3836 = vmatprep.mubr.msk.f32.mxu1 %vm383_vm2, %v4999_v27  ;;  %4062 = vmatprep.mubr.msk.f32.mxu0 %vm383_vm2, %v5008_v40  ;;  %5908 = vst [vmem:[#allocation33_spill] sm:$0xff] %v5035_v0  ;;  %v372_v27 = vrot.slane %v5016_v54, 1  ;;  %v5048_v40 = vld [vmem:[%s4621_s27 + $0x168] sm:$0xff]  ;;  %5910 = vst [vmem:[#allocation35_spill] sm:$0xff] %v5060_v38 }
  0x49   : > { %v5069_v14 = vsel %vm300_vm1, %v371_v23, %v372_v27  ;;  %v379_v23 = vrot.slane %v5075_v48, 1 }
  0x4a   : > { %3837 = vmatmul.mubr.msk.f32.gmra.mrb[24].mxu1 %vm383_vm2, %v5025_v49  ;;  %4063 = vmatmul.mubr.msk.f32.gmra.mrb[8].mxu0 %vm383_vm2, %v5032_v37  ;;  %5912 = vst [vmem:[#allocation37_spill] sm:$0xff] %v5069_v14  ;;  %v1008_v49 = vrot.slane %v4793_v2, 2  ;;  %v376_v37 = vrot.slane %v5048_v40, 1  ;;  %v5089_v2 = vsel %vm300_vm1, %v372_v27, %v374_v62  ;;  %v1016_v27 = vrot.slane %v4842_v29, 2 }
  0x4b   : > { %3839 = vmatprep.mubr.msk.f32.mxu1 %vm383_vm2, %v5035_v0  ;;  %4065 = vmatprep.mubr.msk.f32.mxu0 %vm383_vm2, %v5043_v19  ;;  %v377_v0 = vrot.slane %v5051_v44, 1  ;;  %5913 = vst [vmem:[#allocation38_spill] sm:$0xff] %v5089_v2  ;;  %v1020_v62 = vrot.slane %v4867_v53, 2 }
  0x4c   : > { %v5095_v41 = vsel %vm969_vm3, %v1006_v61, %v1008_v49  ;;  %v1018_v49 = vrot.slane %v4859_v45, 2 }
  0x4d   : > { %v5098_v57 = vsel %vm300_vm1, %v376_v37, %v377_v0  ;;  %v5113_v37 = vsel %vm300_vm1, %v377_v0, %v379_v23  ;;  %v5148_v23 = vld [vmem:[%s5801_s1 + $0xc] sm:$0xf] }
  0x4e   : > { %3840 = vmatmul.mubr.msk.f32.gmra.mrb[26].mxu1 %vm383_vm2, %v5060_v38  ;;  %4066 = vmatmul.mubr.msk.f32.gmra.mrb[10].mxu0 %vm383_vm2, %v5063_v13  ;;  %5914 = vst [vmem:[#allocation39_spill] sm:$0xff] %v5098_v57  ;;  %v1013_v38 = vrot.slane %v4819_v17, 2  ;;  %v5102_v13 = vsel %vm969_vm3, %v1010_v34, %v1011_v33  ;;  %5915 = vst [vmem:[#allocation40_spill] sm:$0xff] %v5113_v37  ;;  %v1021_v34 = vrot.slane %v4870_v55, 2 }
  0x4f   : > { %3842 = vmatprep.mubr.msk.f32.mxu1 %vm383_vm2, %v5069_v14  ;;  %4068 = vmatprep.mubr.msk.f32.mxu0 %vm383_vm2, %v5078_v39  ;;  %v1015_v14 = vrot.slane %v4839_v28, 2  ;;  %v5135_v45 = vsel %vm969_vm3, %v1016_v27, %v1018_v49 }
  0x50   : > { %v5118_v17 = vsel %vm969_vm3, %v1011_v33, %v1013_v38  ;;  %v5139_v0 = vsel %vm969_vm3, %v1020_v62, %v1021_v34  ;;  %v1025_v38 = vrot.slane %v4899_v22, 2  ;;  %v1026_v33 = vrot.slane %v4902_v24, 2 }
  0x51   : > { %v5122_v61 = vsel %vm969_vm3, %v1015_v14, %v1016_v27  ;;  %v1023_v14 = vrot.slane %v4891_v16, 2  ;;  %v1028_v27 = vrot.slane %v4933_v56, 2  ;;  %v1030_v62 = vrot.slane %v4941_v8, 2 }
  0x52   : > { %3843 = vmatmul.mubr.msk.f32.gmra.mrb[28].mxu1 %vm383_vm2, %v5089_v2  ;;  %4069 = vmatmul.mubr.msk.f32.gmra.mrb[12].mxu0 %vm383_vm2, %v5095_v41  ;;  %v5163_v49 = vsel %vm969_vm3, %v1025_v38, %v1026_v33  ;;  %v1035_v38 = vrot.slane %v4978_v46, 2  ;;  %v1046_v2 = vrot.slane %v5051_v44, 2 }
  0x53   : > { %3845 = vmatprep.mubr.msk.f32.mxu1 %vm383_vm2, %v5098_v57  ;;  %4071 = vmatprep.mubr.msk.f32.mxu0 %vm383_vm2, %v5102_v13  ;;  %v5159_v16 = vsel %vm969_vm3, %v1021_v34, %v1023_v14  ;;  %5916 = vst [vmem:[#allocation41_spill] sm:$0xff] %v5163_v49  ;;  %v5178_v56 = vsel %vm969_vm3, %v1026_v33, %v1028_v27  ;;  %v1033_v34 = vrot.slane %v4970_v52, 2  ;;  %v1038_v33 = vrot.slane %v5005_v36, 2 }
  0x54   : > { %v1041_v57 = vrot.slane %v5016_v54, 2 }
  0x56   : > { %3846 = vmatmul.mubr.msk.f32.gmra.mrb[30].mxu1 %vm383_vm2, %v5113_v37  ;;  %4072 = vmatmul.mubr.msk.f32.gmra.mrb[14].mxu0 %vm383_vm2, %v5118_v17  ;;  %v1036_v37 = vrot.slane %v4981_v12, 2 }
  0x57   : > { %3850 = vmatprep.mubr.msk.f32.mxu1 %vm383_vm2, %v4624_v4  ;;  %4074 = vmatprep.mubr.msk.f32.mxu0 %vm383_vm2, %v5122_v61 }
  0x58   : > { %v5199_v27 = vsel %vm969_vm3, %v1035_v38, %v1036_v37  ;;  %v5212_v36 = vsel %vm969_vm3, %v1036_v37, %v1038_v33  ;;  %v1045_v38 = vrot.slane %v5048_v40, 2  ;;  %v1048_v37 = vrot.slane %v5075_v48, 2 }
  0x59   : > { %5918 = vst [vmem:[#allocation43_spill] sm:$0xff] %v5199_v27  ;;  %5919 = vst [vmem:[#allocation44_spill] sm:$0xff] %v5212_v36 }
  0x5a   : > { %3851 = vmatmul.mubr.msk.f32.vlgmr.msra.gmra.mrb[0].mxu1 %vm383_vm2, %v4627_v5  ;;  %4075 = vmatmul.mubr.msk.f32.gmra.mrb[16].mxu0 %vm383_vm2, %v5135_v45  ;;  %v5239_v33 = vsel %vm969_vm3, %v1045_v38, %v1046_v2  ;;  %v5255_v48 = vsel %vm969_vm3, %v1046_v2, %v1048_v37  ;;  %v971_v38 = vrot.slane %v4627_v5, 2  ;;  %v973_v37 = vrot.slane %v4639_v11, 2  ;;  %v5926_v5 = vld [vmem:[#allocation20_spill] sm:$0xff]  ;;  %v5927_v11 = vld [vmem:[#allocation22_spill] sm:$0xff] }
  0x5b   : > { %3899 = vmatpush3.msk.msra.mxu1 %vm448_vm0, %v4696_v35  ;;  %3853 = vmatprep.mubr.msk.f32.mxu1 %vm383_vm2, %v4630_v6  ;;  %v1031_v35 = vrot.slane %v4944_v10, 2  ;;  %v5226_v6 = vld [vmem:[%s4621_s27 + $0x188] sm:$0xff]  ;;  %5922 = vst [vmem:[#allocation47_spill] sm:$0xff] %v5239_v33  ;;  %5923 = vst [vmem:[#allocation48_spill] sm:$0xff] %v5255_v48 }
  0x5c   : > { %4077 = vmatprep.mubr.msk.f32.mxu0 %vm383_vm2, %v5139_v0  ;;  %3948 = vmatprep.subr.msk.mxu1 %vm448_vm0, %v5148_v23 }
  0x5d   : > { %v5182_v14 = vsel %vm969_vm3, %v1030_v62, %v1031_v35  ;;  %v5195_v52 = vsel %vm969_vm3, %v1031_v35, %v1033_v34  ;;  %v1040_v62 = vrot.slane %v5013_v20, 2  ;;  %v1043_v35 = vrot.slane %v5040_v60, 2 }
  0x5e   : > { %3854 = vmatmul.mubr.msk.f32.gmra.mrb[2].mxu1 %vm383_vm2, %v4635_v9  ;;  %4078 = vmatmul.mubr.msk.f32.gmra.mrb[18].mxu0 %vm383_vm2, %v5159_v16  ;;  %5917 = vst [vmem:[#allocation42_spill] sm:$0xff] %v5195_v52  ;;  %v5223_v9 = vld [vmem:[%s4621_s27 + $0x180] sm:$0xff] }
  0x5f   : > { %3856 = vmatprep.mubr.msk.f32.mxu1 %vm383_vm2, %v4647_v15  ;;  %4080 = vmatprep.mubr.msk.f32.mxu0 %vm383_vm2, %v5163_v49  ;;  %v5216_v34 = vsel %vm969_vm3, %v1040_v62, %v1041_v57  ;;  %v5235_v60 = vsel %vm969_vm3, %v1041_v57, %v1043_v35  ;;  %v1916_v62 = vrot.slane %v5223_v9, 2 }
  0x60   : > { %5920 = vst [vmem:[#allocation45_spill] sm:$0xff] %v5216_v34  ;;  %5921 = vst [vmem:[#allocation46_spill] sm:$0xff] %v5235_v60 }
  0x62   : > { %3857 = vmatmul.mubr.msk.f32.gmra.mrb[4].mxu1 %vm383_vm2, %v4652_v18  ;;  %4081 = vmatmul.mubr.msk.f32.gmra.mrb[20].mxu0 %vm383_vm2, %v5178_v56 }
  0x63   : > { %3859 = vmatprep.mubr.msk.f32.mxu1 %vm383_vm2, %v4664_v25  ;;  %4083 = vmatprep.mubr.msk.f32.mxu0 %vm383_vm2, %v5182_v14 }
  0x66   : > { %3860 = vmatmul.mubr.msk.f32.gmra.mrb[6].mxu1 %vm383_vm2, %v4667_v26  ;;  %4084 = vmatmul.mubr.msk.f32.gmra.mrb[22].mxu0 %vm383_vm2, %v5195_v52  ;;  %v5244_v52 = vld [vmem:[%s4621_s27 + $0x190] sm:$0x3] }
  0x67   : > { %3862 = vmatprep.mubr.msk.f32.mxu1 %vm383_vm2, %v4678_v31  ;;  %4086 = vmatprep.mubr.msk.f32.mxu0 %vm383_vm2, %v5199_v27  ;;  %v1917_v27 = vrot.slane %v5226_v6, 2  ;;  %v1919_v57 = vrot.slane %v5244_v52, 2 }
  0x69   : > { %v5259_v35 = vsel %vm969_vm3, %v1916_v62, %v1917_v27  ;;  %v5270_v2 = vsel %vm969_vm3, %v1917_v27, %v1919_v57  ;;  %v5285_v27 = vld [vmem:[%s5801_s1 + $0x20] sm:$0xf] }
  0x6a   : > { %3863 = vmatmul.mubr.msk.f32.gmra.mrb[8].mxu1 %vm383_vm2, %v4681_v32  ;;  %4087 = vmatmul.mubr.msk.f32.gmra.mrb[24].mxu0 %vm383_vm2, %v5212_v36  ;;  %5924 = vst [vmem:[#allocation49_spill] sm:$0xff] %v5259_v35  ;;  %5925 = vst [vmem:[#allocation50_spill] sm:$0xff] %v5270_v2  ;;  %v5931_v57 = vld [vmem:[#allocation30_spill] sm:$0xff] }
  0x6b   : > { %3865 = vmatprep.mubr.msk.f32.mxu1 %vm383_vm2, %v4718_v42  ;;  %4089 = vmatprep.mubr.msk.f32.mxu0 %vm383_vm2, %v5216_v34 }
  0x6e   : > { %3866 = vmatmul.mubr.msk.f32.gmra.mrb[10].mxu1 %vm383_vm2, %v4721_v43  ;;  %4090 = vmatmul.mubr.msk.f32.gmra.mrb[26].mxu0 %vm383_vm2, %v5235_v60 }
  0x6f   : > { %3868 = vmatprep.mubr.msk.f32.mxu1 %vm383_vm2, %v4746_v50  ;;  %4092 = vmatprep.mubr.msk.f32.mxu0 %vm383_vm2, %v5239_v33 }
  0x72   : > { %3869 = vmatmul.mubr.msk.f32.gmra.mrb[12].mxu1 %vm383_vm2, %v4749_v51  ;;  %4093 = vmatmul.mubr.msk.f32.gmra.mrb[28].mxu0 %vm383_vm2, %v5255_v48 }
  0x73   : > { %3871 = vmatprep.mubr.msk.f32.mxu1 %vm383_vm2, %v4772_v58  ;;  %4095 = vmatprep.mubr.msk.f32.mxu0 %vm383_vm2, %v5259_v35  ;;  %v5936_v35 = vld [vmem:[#allocation6_spill] sm:$0xff] }
  0x76   : > { %3872 = vmatmul.mubr.msk.f32.gmra.mrb[14].mxu1 %vm383_vm2, %v4775_v59  ;;  %4096 = vmatmul.mubr.msk.f32.gmra.mrb[30].mxu0 %vm383_vm2, %v5270_v2  ;;  %v5935_v2 = vld [vmem:[#allocation5_spill] sm:$0xff] }
  0x77   : > { %3874 = vmatprep.mubr.msk.f32.mxu1 %vm383_vm2, %v4798_v3  ;;  %4100 = vmatprep.mubr.msk.f32.mxu0 %vm383_vm2, %v4647_v15 }
  0x7a   : > { %3875 = vmatmul.mubr.msk.f32.gmra.mrb[16].mxu1 %vm383_vm2, %v4801_v7  ;;  %4101 = vmatmul.mubr.msk.f32.vlgmr.msra.gmra.mrb[0].mxu0 %vm383_vm2, %v4652_v18 }
  0x7b   : > { %3877 = vmatprep.mubr.msk.f32.mxu1 %vm383_vm2, %v4839_v28  ;;  %4149 = vmatpush3.msk.msra.mxu0 %vm448_vm0, %v4909_v30  ;;  %v970_v30 = vrot.slane %v4624_v4, 2  ;;  %v974_v4 = vsel %vm969_vm3, %v971_v38, %v973_v37  ;;  %v5933_v37 = vld [vmem:[#allocation36_spill] sm:$0xff] }
  0x7c   : > { %4103 = vmatprep.mubr.msk.f32.mxu0 %vm383_vm2, %v4664_v25  ;;  %4198 = vmatprep.subr.msk.mxu0 %vm448_vm0, %v5285_v27 }
  0x7d   : > { %v972_v62 = vsel %vm969_vm3, %v970_v30, %v971_v38  ;;  %v5932_v30 = vld [vmem:[#allocation32_spill] sm:$0xff]  ;;  %v5409_v38 = vld [vmem:[%s4621_s27 + $0x198] sm:$0xff] }
  0x7e   : > { %3878 = vmatmul.mubr.msk.f32.gmra.mrb[18].mxu1 %vm383_vm2, %v4842_v29  ;;  %4104 = vmatmul.mubr.msk.f32.gmra.mrb[2].mxu0 %vm383_vm2, %v4667_v26 }
  0x7f   : > { %3880 = vmatprep.mubr.msk.f32.mxu1 %vm383_vm2, %v4867_v53  ;;  %4106 = vmatprep.mubr.msk.f32.mxu0 %vm383_vm2, %v4678_v31 }
  0x82   : > { %3881 = vmatmul.mubr.msk.f32.gmra.mrb[20].mxu1 %vm383_vm2, %v4870_v55  ;;  %4107 = vmatmul.mubr.msk.f32.gmra.mrb[4].mxu0 %vm383_vm2, %v4681_v32 }
  0x83   : > { %3883 = vmatprep.mubr.msk.f32.mxu1 %vm383_vm2, %v4899_v22  ;;  %4109 = vmatprep.mubr.msk.f32.mxu0 %vm383_vm2, %v4718_v42 }
  0x86   : > { %3884 = vmatmul.mubr.msk.f32.gmra.mrb[22].mxu1 %vm383_vm2, %v4902_v24  ;;  %4110 = vmatmul.mubr.msk.f32.gmra.mrb[6].mxu0 %vm383_vm2, %v4721_v43 }
  0x87   : > { %3886 = vmatprep.mubr.msk.f32.mxu1 %vm383_vm2, %v4941_v8  ;;  %4112 = vmatprep.mubr.msk.f32.mxu0 %vm383_vm2, %v4746_v50 }
  0x8a   : > { %3887 = vmatmul.mubr.msk.f32.gmra.mrb[24].mxu1 %vm383_vm2, %v4944_v10  ;;  %4113 = vmatmul.mubr.msk.f32.gmra.mrb[8].mxu0 %vm383_vm2, %v4749_v51 }
  0x8b   : > { %3889 = vmatprep.mubr.msk.f32.mxu1 %vm383_vm2, %v4978_v46  ;;  %4115 = vmatprep.mubr.msk.f32.mxu0 %vm383_vm2, %v4772_v58 }
  0x8e   : > { %3890 = vmatmul.mubr.msk.f32.gmra.mrb[26].mxu1 %vm383_vm2, %v4981_v12  ;;  %4116 = vmatmul.mubr.msk.f32.gmra.mrb[10].mxu0 %vm383_vm2, %v4775_v59 }
  0x8f   : > { %3892 = vmatprep.mubr.msk.f32.mxu1 %vm383_vm2, %v5013_v20  ;;  %4118 = vmatprep.mubr.msk.f32.mxu0 %vm383_vm2, %v4798_v3 }
  0x92   : > { %3893 = vmatmul.mubr.msk.f32.gmra.mrb[28].mxu1 %vm383_vm2, %v5016_v54  ;;  %4119 = vmatmul.mubr.msk.f32.gmra.mrb[12].mxu0 %vm383_vm2, %v4801_v7 }
  0x93   : > { %3895 = vmatprep.mubr.msk.f32.mxu1 %vm383_vm2, %v5048_v40  ;;  %4121 = vmatprep.mubr.msk.f32.mxu0 %vm383_vm2, %v4839_v28 }
  0x96   : > { %3896 = vmatmul.mubr.msk.f32.gmra.mrb[30].mxu1 %vm383_vm2, %v5051_v44  ;;  %4122 = vmatmul.mubr.msk.f32.gmra.mrb[14].mxu0 %vm383_vm2, %v4842_v29 }
  0x97   : > { %3900 = vmatprep.mubr.msk.f32.mxu1 %vm383_vm2, %v972_v62  ;;  %4124 = vmatprep.mubr.msk.f32.mxu0 %vm383_vm2, %v4867_v53  ;;  %v5420_v62 = vld [vmem:[%s4621_s27 + $0x1a0] sm:$0xff] }
  0x9a   : > { %3901 = vmatmul.mubr.msk.f32.vlgmr.msra.gmra.mrb[0].mxu1 %vm383_vm2, %v974_v4  ;;  %4125 = vmatmul.mubr.msk.f32.gmra.mrb[16].mxu0 %vm383_vm2, %v4870_v55  ;;  %v5934_v4 = vld [vmem:[#allocation4_spill] sm:$0xff] }
  0x9b   : > { %3949 = vmatpush3.msk.msra.mxu1 %vm448_vm0, %v5148_v23  ;;  %3903 = vmatprep.mubr.msk.f32.mxu1 %vm383_vm2, %v4862_v47  ;;  %v5928_v47 = vld [vmem:[#allocation24_spill] sm:$0xff] }
  0x9c   : > { %4127 = vmatprep.mubr.msk.f32.mxu0 %vm383_vm2, %v4899_v22  ;;  %4248 = vmatprep.subr.msk.mxu1 %vm448_vm0, %v4599_v1  ;;  %v5930_v23 = vld [vmem:[#allocation28_spill] sm:$0xff] }
  0x9e   : > { %3904 = vmatmul.mubr.msk.f32.gmra.mrb[2].mxu1 %vm383_vm2, %v4883_v63  ;;  %4128 = vmatmul.mubr.msk.f32.gmra.mrb[18].mxu0 %vm383_vm2, %v4902_v24  ;;  %v5929_v63 = vld [vmem:[#allocation26_spill] sm:$0xff] }
  0x9f   : > { %3906 = vmatprep.mubr.msk.f32.mxu1 %vm383_vm2, %v4894_v21  ;;  %4130 = vmatprep.mubr.msk.f32.mxu0 %vm383_vm2, %v4941_v8 }
  0xa2   : > { %3907 = vmatmul.mubr.msk.f32.gmra.mrb[4].mxu1 %vm383_vm2, %v5926_v5  ;;  %4131 = vmatmul.mubr.msk.f32.gmra.mrb[20].mxu0 %vm383_vm2, %v4944_v10 }
  0xa3   : > { %3909 = vmatprep.mubr.msk.f32.mxu1 %vm383_vm2, %v5927_v11  ;;  %4133 = vmatprep.mubr.msk.f32.mxu0 %vm383_vm2, %v4978_v46 }
  0xa6   : > { %3910 = vmatmul.mubr.msk.f32.gmra.mrb[6].mxu1 %vm383_vm2, %v5928_v47  ;;  %4134 = vmatmul.mubr.msk.f32.gmra.mrb[22].mxu0 %vm383_vm2, %v4981_v12 }
  0xa7   : > { %3912 = vmatprep.mubr.msk.f32.mxu1 %vm383_vm2, %v5929_v63  ;;  %4136 = vmatprep.mubr.msk.f32.mxu0 %vm383_vm2, %v5013_v20 }
  0xaa   : > { %3913 = vmatmul.mubr.msk.f32.gmra.mrb[8].mxu1 %vm383_vm2, %v5930_v23  ;;  %4137 = vmatmul.mubr.msk.f32.gmra.mrb[24].mxu0 %vm383_vm2, %v5016_v54 }
  0xab   : > { %3915 = vmatprep.mubr.msk.f32.mxu1 %vm383_vm2, %v5931_v57  ;;  %4139 = vmatprep.mubr.msk.f32.mxu0 %vm383_vm2, %v5048_v40 }
  0xae   : > { %3916 = vmatmul.mubr.msk.f32.gmra.mrb[10].mxu1 %vm383_vm2, %v5932_v30  ;;  %4140 = vmatmul.mubr.msk.f32.gmra.mrb[26].mxu0 %vm383_vm2, %v5051_v44  ;;  %v5937_v44 = vld [vmem:[#allocation7_spill] sm:$0xff] }
  0xaf   : > { %3918 = vmatprep.mubr.msk.f32.mxu1 %vm383_vm2, %v5043_v19  ;;  %4142 = vmatprep.mubr.msk.f32.mxu0 %vm383_vm2, %v5223_v9 }
  0xb2   : > { %3919 = vmatmul.mubr.msk.f32.gmra.mrb[12].mxu1 %vm383_vm2, %v5933_v37  ;;  %4143 = vmatmul.mubr.msk.f32.gmra.mrb[28].mxu0 %vm383_vm2, %v5226_v6 }
  0xb3   : > { %3921 = vmatprep.mubr.msk.f32.mxu1 %vm383_vm2, %v5078_v39  ;;  %4145 = vmatprep.mubr.msk.f32.mxu0 %vm383_vm2, %v5409_v38 }
  0xb6   : > { %3922 = vmatmul.mubr.msk.f32.gmra.mrb[14].mxu1 %vm383_vm2, %v5095_v41  ;;  %4146 = vmatmul.mubr.msk.f32.gmra.mrb[30].mxu0 %vm383_vm2, %v5420_v62 }
  0xb7   : > { %3924 = vmatprep.mubr.msk.f32.mxu1 %vm383_vm2, %v5102_v13  ;;  %4150 = vmatprep.mubr.msk.f32.mxu0 %vm383_vm2, %v5934_v4  ;;  %v5938_v4 = vld [vmem:[#allocation8_spill] sm:$0xff] }
  0xba   : > { %3925 = vmatmul.mubr.msk.f32.gmra.mrb[16].mxu1 %vm383_vm2, %v5118_v17  ;;  %4151 = vmatmul.mubr.msk.f32.vlgmr.msra.gmra.mrb[0].mxu0 %vm383_vm2, %v5935_v2  ;;  %v5939_v2 = vld [vmem:[#allocation9_spill] sm:$0xff] }
  0xbb   : > { %3927 = vmatprep.mubr.msk.f32.mxu1 %vm383_vm2, %v5122_v61  ;;  %4199 = vmatpush3.msk.msra.mxu0 %vm448_vm0, %v5285_v27  ;;  %v5942_v27 = vld [vmem:[#allocation12_spill] sm:$0xff] }
  0xbc   : > { %4153 = vmatprep.mubr.msk.f32.mxu0 %vm383_vm2, %v5936_v35  ;;  %v5940_v35 = vld [vmem:[#allocation10_spill] sm:$0xff] }
  0xbe   : > { %3928 = vmatmul.mubr.msk.f32.gmra.mrb[18].mxu1 %vm383_vm2, %v5135_v45  ;;  %4154 = vmatmul.mubr.msk.f32.gmra.mrb[2].mxu0 %vm383_vm2, %v5937_v44  ;;  %v5941_v44 = vld [vmem:[#allocation11_spill] sm:$0xff] }
  0xbf   : > { %3930 = vmatprep.mubr.msk.f32.mxu1 %vm383_vm2, %v5139_v0  ;;  %4156 = vmatprep.mubr.msk.f32.mxu0 %vm383_vm2, %v5938_v4  ;;  %v5943_v4 = vld [vmem:[#allocation42_spill] sm:$0xff] }
  0xc2   : > { %3931 = vmatmul.mubr.msk.f32.gmra.mrb[20].mxu1 %vm383_vm2, %v5159_v16  ;;  %4157 = vmatmul.mubr.msk.f32.gmra.mrb[4].mxu0 %vm383_vm2, %v5939_v2  ;;  %v5944_v2 = vld [vmem:[#allocation13_spill] sm:$0xff] }
  0xc3   : > { %3933 = vmatprep.mubr.msk.f32.mxu1 %vm383_vm2, %v5163_v49  ;;  %4159 = vmatprep.mubr.msk.f32.mxu0 %vm383_vm2, %v5940_v35  ;;  %v5945_v49 = vld [vmem:[#allocation43_spill] sm:$0xff]  ;;  %v5946_v35 = vld [vmem:[#allocation14_spill] sm:$0xff] }
  0xc6   : > { %3934 = vmatmul.mubr.msk.f32.gmra.mrb[22].mxu1 %vm383_vm2, %v5178_v56  ;;  %4160 = vmatmul.mubr.msk.f32.gmra.mrb[6].mxu0 %vm383_vm2, %v5941_v44  ;;  %v5947_v44 = vld [vmem:[#allocation15_spill] sm:$0xff] }
  0xc7   : > { %3936 = vmatprep.mubr.msk.f32.mxu1 %vm383_vm2, %v5182_v14  ;;  %4162 = vmatprep.mubr.msk.f32.mxu0 %vm383_vm2, %v5942_v27  ;;  %v5948_v27 = vld [vmem:[#allocation16_spill] sm:$0xff] }
  0xca   : > { %3937 = vmatmul.mubr.msk.f32.gmra.mrb[24].mxu1 %vm383_vm2, %v5943_v4  ;;  %4163 = vmatmul.mubr.msk.f32.gmra.mrb[8].mxu0 %vm383_vm2, %v5944_v2  ;;  %v5949_v2 = vld [vmem:[#allocation17_spill] sm:$0xff] }
  0xcb   : > { %3939 = vmatprep.mubr.msk.f32.mxu1 %vm383_vm2, %v5945_v49  ;;  %4165 = vmatprep.mubr.msk.f32.mxu0 %vm383_vm2, %v5946_v35  ;;  %v5950_v35 = vld [vmem:[#allocation18_spill] sm:$0xff] }
  0xce   : > { %3940 = vmatmul.mubr.msk.f32.gmra.mrb[26].mxu1 %vm383_vm2, %v5212_v36  ;;  %4166 = vmatmul.mubr.msk.f32.gmra.mrb[10].mxu0 %vm383_vm2, %v5947_v44  ;;  %v5951_v44 = vld [vmem:[#allocation19_spill] sm:$0xff] }
  0xcf   : > { %3942 = vmatprep.mubr.msk.f32.mxu1 %vm383_vm2, %v5216_v34  ;;  %4168 = vmatprep.mubr.msk.f32.mxu0 %vm383_vm2, %v5948_v27  ;;  %v5952_v34 = vld [vmem:[#allocation2_spill] sm:$0xff]  ;;  %v5953_v27 = vld [vmem:[#allocation21_spill] sm:$0xff]  ;;  %v5547_v36 = vld [vmem:[%s4621_s27 + $0x1a8] sm:$0x3] }
  0xd2   : > { %3943 = vmatmul.mubr.msk.f32.gmra.mrb[28].mxu1 %vm383_vm2, %v5235_v60  ;;  %4169 = vmatmul.mubr.msk.f32.gmra.mrb[12].mxu0 %vm383_vm2, %v5949_v2  ;;  %v5954_v60 = vld [vmem:[#allocation3_spill] sm:$0xff] }
  0xd3   : > { %3945 = vmatprep.mubr.msk.f32.mxu1 %vm383_vm2, %v5239_v33  ;;  %4171 = vmatprep.mubr.msk.f32.mxu0 %vm383_vm2, %v5950_v35  ;;  %v5955_v2 = vld [vmem:[#allocation23_spill] sm:$0xff]  ;;  %v5963_v33 = vld [vmem:[#allocation38_spill] sm:$0xff] }
  0xd6   : > { %3946 = vmatmul.mubr.msk.f32.gmra.mrb[30].mxu1 %vm383_vm2, %v5255_v48  ;;  %4172 = vmatmul.mubr.msk.f32.gmra.mrb[14].mxu0 %vm383_vm2, %v5951_v44  ;;  %v5956_v48 = vld [vmem:[#allocation25_spill] sm:$0xff] }
  0xd7   : > { %3950 = vmatprep.mubr.msk.f32.mxu1 %vm383_vm2, %v5952_v34  ;;  %4174 = vmatprep.mubr.msk.f32.mxu0 %vm383_vm2, %v5953_v27  ;;  %v5957_v34 = vld [vmem:[#allocation27_spill] sm:$0xff] }
  0xda   : > { %3951 = vmatmul.mubr.msk.f32.vlgmr.msra.gmra.mrb[0].mxu1 %vm383_vm2, %v5954_v60  ;;  %4175 = vmatmul.mubr.msk.f32.gmra.mrb[16].mxu0 %vm383_vm2, %v5955_v2  ;;  %v5958_v60 = vld [vmem:[#allocation29_spill] sm:$0xff] }
  0xdb   : > { %4249 = vmatpush3.msk.msra.mxu1 %vm448_vm0, %v4599_v1  ;;  %3953 = vmatprep.mubr.msk.f32.mxu1 %vm383_vm2, %v4647_v15  ;;  %v5959_v1 = vld [vmem:[#allocation31_spill] sm:$0xff]  ;;  %v5960_v15 = vld [vmem:[#allocation33_spill] sm:$0xff] }
  0xdc   : > { %4177 = vmatprep.mubr.msk.f32.mxu0 %vm383_vm2, %v5956_v48 }
  0xde   : > { %3954 = vmatmul.mubr.msk.f32.gmra.mrb[2].mxu1 %vm383_vm2, %v4652_v18  ;;  %4178 = vmatmul.mubr.msk.f32.gmra.mrb[18].mxu0 %vm383_vm2, %v5957_v34  ;;  %v5961_v18 = vld [vmem:[#allocation35_spill] sm:$0xff] }
  0xdf   : > { %3956 = vmatprep.mubr.msk.f32.mxu1 %vm383_vm2, %v4664_v25  ;;  %4180 = vmatprep.mubr.msk.f32.mxu0 %vm383_vm2, %v5958_v60  ;;  %v5962_v25 = vld [vmem:[#allocation37_spill] sm:$0xff] }
  0xe2   : > { %3957 = vmatmul.mubr.msk.f32.gmra.mrb[4].mxu1 %vm383_vm2, %v4667_v26  ;;  %4181 = vmatmul.mubr.msk.f32.gmra.mrb[20].mxu0 %vm383_vm2, %v5959_v1  ;;  %v1645_v26 = vrot.slane %v5223_v9, 1 }
  0xe3   : > { %3959 = vmatprep.mubr.msk.f32.mxu1 %vm383_vm2, %v4678_v31  ;;  %4183 = vmatprep.mubr.msk.f32.mxu0 %vm383_vm2, %v5960_v15  ;;  %v1646_v31 = vrot.slane %v5226_v6, 1 }
  0xe5   : > { %v5544_v15 = vsel %vm300_vm1, %v1645_v26, %v1646_v31 }
  0xe6   : > { %3960 = vmatmul.mubr.msk.f32.gmra.mrb[6].mxu1 %vm383_vm2, %v4681_v32  ;;  %4184 = vmatmul.mubr.msk.f32.gmra.mrb[22].mxu0 %vm383_vm2, %v5961_v18  ;;  %v5964_v32 = vld [vmem:[#allocation39_spill] sm:$0xff]  ;;  %v2457_v18 = vrot.slane %v5420_v62, 1 }
  0xe7   : > { %3962 = vmatprep.mubr.msk.f32.mxu1 %vm383_vm2, %v4718_v42  ;;  %4186 = vmatprep.mubr.msk.f32.mxu0 %vm383_vm2, %v5962_v25  ;;  %v1648_v42 = vrot.slane %v5244_v52, 1  ;;  %v2456_v25 = vrot.slane %v5409_v38, 1  ;;  %v2459_v52 = vrot.slane %v5547_v36, 1 }
  0xe9   : > { %v2458_v26 = vsel %vm300_vm1, %v2456_v25, %v2457_v18 }
  0xea   : > { %3963 = vmatmul.mubr.msk.f32.gmra.mrb[8].mxu1 %vm383_vm2, %v4721_v43  ;;  %4187 = vmatmul.mubr.msk.f32.gmra.mrb[24].mxu0 %vm383_vm2, %v5963_v33  ;;  %v5965_v43 = vld [vmem:[#allocation40_spill] sm:$0xff] }
  0xeb   : > { %3965 = vmatprep.mubr.msk.f32.mxu1 %vm383_vm2, %v4746_v50  ;;  %4189 = vmatprep.mubr.msk.f32.mxu0 %vm383_vm2, %v5964_v32  ;;  %v5558_v50 = vsel %vm300_vm1, %v1646_v31, %v1648_v42 }
  0xee   : > { %3966 = vmatmul.mubr.msk.f32.gmra.mrb[10].mxu1 %vm383_vm2, %v4749_v51  ;;  %4190 = vmatmul.mubr.msk.f32.gmra.mrb[26].mxu0 %vm383_vm2, %v5965_v43  ;;  %v2460_v51 = vsel %vm300_vm1, %v2457_v18, %v2459_v52 }
  0xef   : > { %3968 = vmatprep.mubr.msk.f32.mxu1 %vm383_vm2, %v4772_v58  ;;  %4192 = vmatprep.mubr.msk.f32.mxu0 %vm383_vm2, %v5544_v15  ;;  %v5969_v58 = vld [vmem:[#allocation33_spill] sm:$0xff] }
  0xf2   : > { %3969 = vmatmul.mubr.msk.f32.gmra.mrb[12].mxu1 %vm383_vm2, %v4775_v59  ;;  %4193 = vmatmul.mubr.msk.f32.gmra.mrb[28].mxu0 %vm383_vm2, %v5558_v50  ;;  %v5970_v59 = vld [vmem:[#allocation45_spill] sm:$0xff] }
  0xf3   : > { %3971 = vmatprep.mubr.msk.f32.mxu1 %vm383_vm2, %v4798_v3  ;;  %4195 = vmatprep.mubr.msk.f32.mxu0 %vm383_vm2, %v2458_v26  ;;  %v5971_v3 = vld [vmem:[#allocation35_spill] sm:$0xff] }
  0xf6   : > { %3972 = vmatmul.mubr.msk.f32.gmra.mrb[14].mxu1 %vm383_vm2, %v4801_v7  ;;  %4196 = vmatmul.mubr.msk.f32.gmra.mrb[30].mxu0 %vm383_vm2, %v2460_v51  ;;  %v5972_v7 = vld [vmem:[#allocation46_spill] sm:$0xff] }
  0xf7   : > { %3974 = vmatprep.mubr.msk.f32.mxu1 %vm383_vm2, %v4839_v28  ;;  %4200 = vmatprep.mubr.msk.f32.mxu0 %vm383_vm2, %v4894_v21  ;;  %v2727_v28 = vrot.slane %v5409_v38, 2  ;;  %v2730_v21 = vrot.slane %v5547_v36, 2 }
  0xfa   : > { %3975 = vmatmul.mubr.msk.f32.gmra.mrb[16].mxu1 %vm383_vm2, %v4842_v29  ;;  %4201 = vmatmul.mubr.msk.f32.vlgmr.msra.gmra.mrb[0].mxu0 %vm383_vm2, %v5926_v5  ;;  %v2728_v29 = vrot.slane %v5420_v62, 2 }
  0xfb   : > { %3977 = vmatprep.mubr.msk.f32.mxu1 %vm383_vm2, %v4867_v53  ;;  %4203 = vmatprep.mubr.msk.f32.mxu0 %vm383_vm2, %v5927_v11  ;;  %v5975_v53 = vld [vmem:[#allocation48_spill] sm:$0xff] }
  0xfe   : > { %3978 = vmatmul.mubr.msk.f32.gmra.mrb[18].mxu1 %vm383_vm2, %v4870_v55  ;;  %4204 = vmatmul.mubr.msk.f32.gmra.mrb[2].mxu0 %vm383_vm2, %v5928_v47  ;;  %v5976_v55 = vld [vmem:[#allocation49_spill] sm:$0xff] }
  0xff   : > { %3980 = vmatprep.mubr.msk.f32.mxu1 %vm383_vm2, %v4899_v22  ;;  %4206 = vmatprep.mubr.msk.f32.mxu0 %vm383_vm2, %v5929_v63  ;;  %v5974_v22 = vld [vmem:[#allocation47_spill] sm:$0xff] }
 0x102   : > { %3981 = vmatmul.mubr.msk.f32.gmra.mrb[20].mxu1 %vm383_vm2, %v4902_v24  ;;  %4207 = vmatmul.mubr.msk.f32.gmra.mrb[4].mxu0 %vm383_vm2, %v5930_v23  ;;  %v2729_v24 = vsel %vm969_vm3, %v2727_v28, %v2728_v29 }
 0x103   : > { %3983 = vmatprep.mubr.msk.f32.mxu1 %vm383_vm2, %v4941_v8  ;;  %4209 = vmatprep.mubr.msk.f32.mxu0 %vm383_vm2, %v5931_v57  ;;  %v5973_v8 = vld [vmem:[#allocation37_spill] sm:$0xff] }
 0x106   : > { %3984 = vmatmul.mubr.msk.f32.gmra.mrb[22].mxu1 %vm383_vm2, %v4944_v10  ;;  %4210 = vmatmul.mubr.msk.f32.gmra.mrb[6].mxu0 %vm383_vm2, %v5932_v30  ;;  %v5977_v10 = vld [vmem:[#allocation50_spill] sm:$0xff] }
 0x107   : > { %3986 = vmatprep.mubr.msk.f32.mxu1 %vm383_vm2, %v4978_v46  ;;  %4212 = vmatprep.mubr.msk.f32.mxu0 %vm383_vm2, %v5043_v19  ;;  %v5966_v46 = vld [vmem:[#allocation34_spill] sm:$0xff] }
 0x10a   : > { %3987 = vmatmul.mubr.msk.f32.gmra.mrb[24].mxu1 %vm383_vm2, %v4981_v12  ;;  %4213 = vmatmul.mubr.msk.f32.gmra.mrb[8].mxu0 %vm383_vm2, %v5933_v37  ;;  %v2731_v12 = vsel %vm969_vm3, %v2728_v29, %v2730_v21 }
 0x10b   : > { %3989 = vmatprep.mubr.msk.f32.mxu1 %vm383_vm2, %v5013_v20  ;;  %4215 = vmatprep.mubr.msk.f32.mxu0 %vm383_vm2, %v5078_v39 }
 0x10e   : > { %3990 = vmatmul.mubr.msk.f32.gmra.mrb[26].mxu1 %vm383_vm2, %v5016_v54  ;;  %4216 = vmatmul.mubr.msk.f32.gmra.mrb[10].mxu0 %vm383_vm2, %v5095_v41 }
 0x10f   : > { %3992 = vmatprep.mubr.msk.f32.mxu1 %vm383_vm2, %v5048_v40  ;;  %4218 = vmatprep.mubr.msk.f32.mxu0 %vm383_vm2, %v5102_v13 }
 0x112   : > { %3993 = vmatmul.mubr.msk.f32.gmra.mrb[28].mxu1 %vm383_vm2, %v5966_v46  ;;  %4219 = vmatmul.mubr.msk.f32.gmra.mrb[12].mxu0 %vm383_vm2, %v5118_v17 }
 0x113   : > { %3995 = vmatprep.mubr.msk.f32.mxu1 %vm383_vm2, %v5223_v9  ;;  %4221 = vmatprep.mubr.msk.f32.mxu0 %vm383_vm2, %v5122_v61  ;;  %v5967_v9 = vld [vmem:[#allocation41_spill] sm:$0xff] }
 0x116   : > { %3996 = vmatmul.mubr.msk.f32.gmra.mrb[30].mxu1 %vm383_vm2, %v5226_v6  ;;  %4222 = vmatmul.mubr.msk.f32.gmra.mrb[14].mxu0 %vm383_vm2, %v5135_v45  ;;  %v5968_v6 = vld [vmem:[#allocation44_spill] sm:$0xff] }
 0x117   : > { %4024 = vmatprep.mubr.msk.f32.mxu1 %vm383_vm2, %v5950_v35  ;;  %4224 = vmatprep.mubr.msk.f32.mxu0 %vm383_vm2, %v5139_v0 }
 0x11a   : > { %4025 = vmatmul.mubr.msk.f32.vlgmr.msra.gmra.mrb[16].mxu1 %vm383_vm2, %v5951_v44  ;;  %4225 = vmatmul.mubr.msk.f32.gmra.mrb[16].mxu0 %vm383_vm2, %v5159_v16 }
 0x11b   : > { %4027 = vmatprep.mubr.msk.f32.mxu1 %vm383_vm2, %v5953_v27  ;;  %4227 = vmatprep.mubr.msk.f32.mxu0 %vm383_vm2, %v5967_v9 }
 0x11e   : > { %4028 = vmatmul.mubr.msk.f32.gmra.mrb[18].mxu1 %vm383_vm2, %v5955_v2  ;;  %4228 = vmatmul.mubr.msk.f32.gmra.mrb[18].mxu0 %vm383_vm2, %v5178_v56 }
 0x11f   : > { %4030 = vmatprep.mubr.msk.f32.mxu1 %vm383_vm2, %v5956_v48  ;;  %4230 = vmatprep.mubr.msk.f32.mxu0 %vm383_vm2, %v5182_v14  ;;  %v5715_v48 = vld [vmem:[%s5802_s2] ss:$0 sm:$0xff] }
 0x122   : > { %4031 = vmatmul.mubr.msk.f32.gmra.mrb[20].mxu1 %vm383_vm2, %v5957_v34  ;;  %4231 = vmatmul.mubr.msk.f32.gmra.mrb[20].mxu0 %vm383_vm2, %v5943_v4 }
 0x123   : > { %4033 = vmatprep.mubr.msk.f32.mxu1 %vm383_vm2, %v5958_v60  ;;  %4233 = vmatprep.mubr.msk.f32.mxu0 %vm383_vm2, %v5945_v49 }
 0x126   : > { %4034 = vmatmul.mubr.msk.f32.gmra.mrb[22].mxu1 %vm383_vm2, %v5959_v1  ;;  %4234 = vmatmul.mubr.msk.f32.gmra.mrb[22].mxu0 %vm383_vm2, %v5968_v6 }
 0x127   : > { %4036 = vmatprep.mubr.msk.f32.mxu1 %vm383_vm2, %v5969_v58  ;;  %4236 = vmatprep.mubr.msk.f32.mxu0 %vm383_vm2, %v5970_v59 }
 0x12a   : > { %4037 = vmatmul.mubr.msk.f32.gmra.mrb[24].mxu1 %vm383_vm2, %v5971_v3  ;;  %4237 = vmatmul.mubr.msk.f32.gmra.mrb[24].mxu0 %vm383_vm2, %v5972_v7 }
 0x12b   : > { %4039 = vmatprep.mubr.msk.f32.mxu1 %vm383_vm2, %v5973_v8  ;;  %4239 = vmatprep.mubr.msk.f32.mxu0 %vm383_vm2, %v5974_v22 }
 0x12e   : > { %4040 = vmatmul.mubr.msk.f32.gmra.mrb[26].mxu1 %vm383_vm2, %v5963_v33  ;;  %4240 = vmatmul.mubr.msk.f32.gmra.mrb[26].mxu0 %vm383_vm2, %v5975_v53 }
 0x12f   : > { %4042 = vmatprep.mubr.msk.f32.mxu1 %vm383_vm2, %v5964_v32  ;;  %4242 = vmatprep.mubr.msk.f32.mxu0 %vm383_vm2, %v5976_v55 }
 0x132   : > { %4043 = vmatmul.mubr.msk.f32.gmra.mrb[28].mxu1 %vm383_vm2, %v5965_v43  ;;  %4243 = vmatmul.mubr.msk.f32.gmra.mrb[28].mxu0 %vm383_vm2, %v5977_v10 }
 0x133   : > { %4045 = vmatprep.mubr.msk.f32.mxu1 %vm383_vm2, %v5544_v15  ;;  %4245 = vmatprep.mubr.msk.f32.mxu0 %vm383_vm2, %v2729_v24 }
 0x136   : > { %4046 = vmatmul.mubr.msk.f32.gmra.mrb[30].mxu1 %vm383_vm2, %v5558_v50  ;;  %4246 = vmatmul.mubr.msk.f32.gmra.mrb[30].mxu0 %vm383_vm2, %v2731_v12 }
 0x1ad   : > { %v3952_v40 = vpop.f32.mrb[0].mxu1 }
 0x1ae   : > { %v1453_v20 = vpop.f32.mrb[1].mxu1 }
 0x1b1   : > { %v3955_v54 = vpop.f32.mrb[2].mxu1 }
 0x1b2   : > { %v1463_v19 = vpop.f32.mrb[3].mxu1 }
 0x1b5   : > { %v3958_v13 = vpop.f32.mrb[4].mxu1 }
 0x1b6   : > { %v1473_v39 = vpop.f32.mrb[5].mxu1 }
 0x1b9   : > { %v3961_v41 = vpop.f32.mrb[6].mxu1 }
 0x1ba   : > { %v1483_v17 = vpop.f32.mrb[7].mxu1 }
 0x1bd   : > { %v3964_v61 = vpop.f32.mrb[8].mxu1 }
 0x1be   : > { %v1493_v45 = vpop.f32.mrb[9].mxu1 }
 0x1c1   : > { %v3967_v0 = vpop.f32.mrb[10].mxu1 }
 0x1c2   : > { %v1503_v16 = vpop.f32.mrb[11].mxu1 }
 0x1c5   : > { %v5704_v49 = vpop.f32.mrb[12].mxu1 }
 0x1c6   : > { %v5706_v56 = vpop.f32.mrb[13].mxu1 }
 0x1c9   : > { %v5708_v14 = vpop.f32.mrb[14].mxu1 }
 0x1ca   : > { %v5710_v36 = vpop.f32.mrb[15].mxu1 }
 0x1cd   : > { %v4202_v33 = vpop.f32.mrb[0].mxu0 }
 0x1ce   : > { %v4250_v5 = vadd.f32 %v4202_v33, %v3952_v40  ;;  %v2807_v11 = vpop.f32.mrb[1].mxu0 }
 0x1cf   : > { %v4251_v47 = vadd.f32 %v2807_v11, %v1453_v20 }
 0x1d0   : > { %v3006_v63 = vadd.f32 %v4250_v5, %v5715_v48 }
 0x1d1   : > { %v3005_v23 = vadd.f32 %v4251_v47, %v5715_v48  ;;  %v4205_v57 = vpop.f32.mrb[2].mxu0 }
 0x1d2   : > { %v3038_v30 = vmax.f32 %v3006_v63, 0.0  ;;  %v4252_v38 = vadd.f32 %v4205_v57, %v3955_v54  ;;  %v2817_v37 = vpop.f32.mrb[3].mxu0 }
 0x1d3   : > { %v3037_v62 = vmax.f32 %v3005_v23, 0.0  ;;  %v4253_v4 = vadd.f32 %v2817_v37, %v1463_v19 }
 0x1d4   : > { %3070 = vst [vmem:[%s5722_s20 + $0x8] sm:$0xff] %v3038_v30  ;;  %v3008_v35 = vadd.f32 %v4252_v38, %v5715_v48 }
 0x1d5   : > { %3069 = vst [vmem:[%s5722_s20] sm:$0xff] %v3037_v62  ;;  %v3007_v44 = vadd.f32 %v4253_v4, %v5715_v48  ;;  %v4208_v27 = vpop.f32.mrb[4].mxu0 }
 0x1d6   : > { %v3040_v2 = vmax.f32 %v3008_v35, 0.0  ;;  %v4254_v34 = vadd.f32 %v4208_v27, %v3958_v13  ;;  %v2827_v60 = vpop.f32.mrb[5].mxu0 }
 0x1d7   : > { %v3039_v1 = vmax.f32 %v3007_v44, 0.0  ;;  %v4255_v15 = vadd.f32 %v2827_v60, %v1473_v39 }
 0x1d8   : > { %3072 = vst [vmem:[%s5722_s20 + $0x18] sm:$0xff] %v3040_v2  ;;  %v3010_v18 = vadd.f32 %v4254_v34, %v5715_v48 }
 0x1d9   : > { %3071 = vst [vmem:[%s5722_s20 + $0x10] sm:$0xff] %v3039_v1  ;;  %v3009_v25 = vadd.f32 %v4255_v15, %v5715_v48  ;;  %v4211_v31 = vpop.f32.mrb[6].mxu0 }
 0x1da   : > { %v3042_v32 = vmax.f32 %v3010_v18, 0.0  ;;  %v4256_v42 = vadd.f32 %v4211_v31, %v3961_v41  ;;  %v2837_v43 = vpop.f32.mrb[7].mxu0 }
 0x1db   : > { %v3041_v50 = vmax.f32 %v3009_v25, 0.0  ;;  %v4257_v52 = vadd.f32 %v2837_v43, %v1483_v17 }
 0x1dc   : > { %3074 = vst [vmem:[%s5722_s20 + $0x28] sm:$0xff] %v3042_v32  ;;  %v3012_v26 = vadd.f32 %v4256_v42, %v5715_v48 }
 0x1dd   : > { %3073 = vst [vmem:[%s5722_s20 + $0x20] sm:$0xff] %v3041_v50  ;;  %v3011_v51 = vadd.f32 %v4257_v52, %v5715_v48  ;;  %v4214_v46 = vpop.f32.mrb[8].mxu0 }
 0x1de   : > { %v3044_v9 = vmax.f32 %v3012_v26, 0.0  ;;  %v4258_v6 = vadd.f32 %v4214_v46, %v3964_v61  ;;  %v2847_v58 = vpop.f32.mrb[9].mxu0 }
 0x1df   : > { %v3043_v59 = vmax.f32 %v3011_v51, 0.0  ;;  %v4259_v3 = vadd.f32 %v2847_v58, %v1493_v45 }
 0x1e0   : > { %3076 = vst [vmem:[%s5722_s20 + $0x38] sm:$0xff] %v3044_v9  ;;  %v3014_v7 = vadd.f32 %v4258_v6, %v5715_v48 }
 0x1e1   : > { %3075 = vst [vmem:[%s5722_s20 + $0x30] sm:$0xff] %v3043_v59  ;;  %v3013_v8 = vadd.f32 %v4259_v3, %v5715_v48  ;;  %v4217_v22 = vpop.f32.mrb[10].mxu0 }
 0x1e2   : > { %v3046_v28 = vmax.f32 %v3014_v7, 0.0  ;;  %v4260_v29 = vadd.f32 %v4217_v22, %v3967_v0  ;;  %v2857_v53 = vpop.f32.mrb[11].mxu0 }
 0x1e3   : > { %v3045_v55 = vmax.f32 %v3013_v8, 0.0  ;;  %v4261_v21 = vadd.f32 %v2857_v53, %v1503_v16 }
 0x1e4   : > { %3078 = vst [vmem:[%s5722_s20 + $0x48] sm:$0xff] %v3046_v28  ;;  %v3016_v24 = vadd.f32 %v4260_v29, %v5715_v48 }
 0x1e5   : > { %3077 = vst [vmem:[%s5722_s20 + $0x40] sm:$0xff] %v3045_v55  ;;  %v3015_v10 = vadd.f32 %v4261_v21, %v5715_v48  ;;  %v4220_v12 = vpop.f32.mrb[12].mxu0 }
 0x1e6   : > { %v3048_v40 = vmax.f32 %v3016_v24, 0.0  ;;  %v4262_v20 = vadd.f32 %v4220_v12, %v5704_v49  ;;  %v2867_v54 = vpop.f32.mrb[13].mxu0 }
 0x1e7   : > { %v3047_v19 = vmax.f32 %v3015_v10, 0.0  ;;  %v4263_v13 = vadd.f32 %v2867_v54, %v5706_v56 }
 0x1e8   : > { %3080 = vst [vmem:[%s5722_s20 + $0x58] sm:$0xff] %v3048_v40  ;;  %v3018_v39 = vadd.f32 %v4262_v20, %v5715_v48 }
 0x1e9   : > { %3079 = vst [vmem:[%s5722_s20 + $0x50] sm:$0xff] %v3047_v19  ;;  %v3017_v41 = vadd.f32 %v4263_v13, %v5715_v48  ;;  %v4223_v17 = vpop.f32.mrb[14].mxu0 }
 0x1ea   : > { %v3050_v61 = vmax.f32 %v3018_v39, 0.0  ;;  %v4264_v45 = vadd.f32 %v4223_v17, %v5708_v14  ;;  %v2877_v0 = vpop.f32.mrb[15].mxu0 }
 0x1eb   : > { %v3049_v16 = vmax.f32 %v3017_v41, 0.0  ;;  %v4265_v49 = vadd.f32 %v2877_v0, %v5710_v36 }
 0x1ec   : > { %3082 = vst [vmem:[%s5722_s20 + $0x68] sm:$0xff] %v3050_v61  ;;  %v3020_v33 = vadd.f32 %v4264_v45, %v5715_v48 }
 0x1ed   : > { %v4026_v56 = vpop.f32.mrb[16].mxu1  ;;  %3081 = vst [vmem:[%s5722_s20 + $0x60] sm:$0xff] %v3049_v16  ;;  %v3019_v5 = vadd.f32 %v4265_v49, %v5715_v48  ;;  %v4226_v11 = vpop.f32.mrb[16].mxu0 }
 0x1ee   : > { %v1805_v47 = vpop.f32.mrb[17].mxu1  ;;  %v3052_v63 = vmax.f32 %v3020_v33, 0.0  ;;  %v4266_v23 = vadd.f32 %v4226_v11, %v4026_v56  ;;  %v2887_v57 = vpop.f32.mrb[17].mxu0 }
 0x1ef   : > { %v3051_v14 = vmax.f32 %v3019_v5, 0.0  ;;  %v4267_v30 = vadd.f32 %v2887_v57, %v1805_v47 }
 0x1f0   : > { %3084 = vst [vmem:[%s5722_s20 + $0x78] sm:$0xff] %v3052_v63  ;;  %v3022_v36 = vadd.f32 %v4266_v23, %v5715_v48 }
 0x1f1   : > { %v4029_v38 = vpop.f32.mrb[18].mxu1  ;;  %3083 = vst [vmem:[%s5722_s20 + $0x70] sm:$0xff] %v3051_v14  ;;  %v3021_v37 = vadd.f32 %v4267_v30, %v5715_v48  ;;  %v4229_v62 = vpop.f32.mrb[18].mxu0 }
 0x1f2   : > { %v1815_v4 = vpop.f32.mrb[19].mxu1  ;;  %v3054_v35 = vmax.f32 %v3022_v36, 0.0  ;;  %v4268_v44 = vadd.f32 %v4229_v62, %v4029_v38  ;;  %v2897_v27 = vpop.f32.mrb[19].mxu0 }
 0x1f3   : > { %v3053_v2 = vmax.f32 %v3021_v37, 0.0  ;;  %v4269_v34 = vadd.f32 %v2897_v27, %v1815_v4 }
 0x1f4   : > { %3086 = vst [vmem:[%s5722_s20 + $0x88] sm:$0xff] %v3054_v35  ;;  %v3024_v60 = vadd.f32 %v4268_v44, %v5715_v48 }
 0x1f5   : > { %v4032_v1 = vpop.f32.mrb[20].mxu1  ;;  %3085 = vst [vmem:[%s5722_s20 + $0x80] sm:$0xff] %v3053_v2  ;;  %v3023_v15 = vadd.f32 %v4269_v34, %v5715_v48  ;;  %v4232_v18 = vpop.f32.mrb[20].mxu0 }
 0x1f6   : > { %v1825_v25 = vpop.f32.mrb[21].mxu1  ;;  %v3056_v31 = vmax.f32 %v3024_v60, 0.0  ;;  %v4270_v32 = vadd.f32 %v4232_v18, %v4032_v1  ;;  %v2907_v42 = vpop.f32.mrb[21].mxu0 }
 0x1f7   : > { %v3055_v43 = vmax.f32 %v3023_v15, 0.0  ;;  %v4271_v50 = vadd.f32 %v2907_v42, %v1825_v25 }
 0x1f8   : > { %3088 = vst [vmem:[%s5722_s20 + $0x98] sm:$0xff] %v3056_v31  ;;  %v3026_v52 = vadd.f32 %v4270_v32, %v5715_v48 }
 0x1f9   : > { %v4035_v26 = vpop.f32.mrb[22].mxu1  ;;  %3087 = vst [vmem:[%s5722_s20 + $0x90] sm:$0xff] %v3055_v43  ;;  %v3025_v51 = vadd.f32 %v4271_v50, %v5715_v48  ;;  %v4235_v46 = vpop.f32.mrb[22].mxu0 }
 0x1fa   : > { %v1835_v9 = vpop.f32.mrb[23].mxu1  ;;  %v3058_v6 = vmax.f32 %v3026_v52, 0.0  ;;  %v4272_v58 = vadd.f32 %v4235_v46, %v4035_v26  ;;  %v2917_v59 = vpop.f32.mrb[23].mxu0 }
 0x1fb   : > { %v3057_v3 = vmax.f32 %v3025_v51, 0.0  ;;  %v4273_v7 = vadd.f32 %v2917_v59, %v1835_v9 }
 0x1fc   : > { %3090 = vst [vmem:[%s5722_s20 + $0xa8] sm:$0xff] %v3058_v6  ;;  %v3028_v8 = vadd.f32 %v4272_v58, %v5715_v48 }
 0x1fd   : > { %v4038_v22 = vpop.f32.mrb[24].mxu1  ;;  %3089 = vst [vmem:[%s5722_s20 + $0xa0] sm:$0xff] %v3057_v3  ;;  %v3027_v28 = vadd.f32 %v4273_v7, %v5715_v48  ;;  %v4238_v29 = vpop.f32.mrb[24].mxu0 }
 0x1fe   : > { %v1845_v53 = vpop.f32.mrb[25].mxu1  ;;  %v3060_v55 = vmax.f32 %v3028_v8, 0.0  ;;  %v4274_v21 = vadd.f32 %v4238_v29, %v4038_v22  ;;  %v2927_v24 = vpop.f32.mrb[25].mxu0 }
 0x1ff   : > { %v3059_v10 = vmax.f32 %v3027_v28, 0.0  ;;  %v4275_v12 = vadd.f32 %v2927_v24, %v1845_v53 }
 0x200   : > { %3092 = vst [vmem:[%s5722_s20 + $0xb8] sm:$0xff] %v3060_v55  ;;  %v3030_v40 = vadd.f32 %v4274_v21, %v5715_v48 }
 0x201   : > { %v4041_v20 = vpop.f32.mrb[26].mxu1  ;;  %3091 = vst [vmem:[%s5722_s20 + $0xb0] sm:$0xff] %v3059_v10  ;;  %v3029_v54 = vadd.f32 %v4275_v12, %v5715_v48  ;;  %v4241_v19 = vpop.f32.mrb[26].mxu0 }
 0x202   : > { %v1855_v13 = vpop.f32.mrb[27].mxu1  ;;  %v3062_v39 = vmax.f32 %v3030_v40, 0.0  ;;  %v4276_v41 = vadd.f32 %v4241_v19, %v4041_v20  ;;  %v2937_v17 = vpop.f32.mrb[27].mxu0 }
 0x203   : > { %v3061_v61 = vmax.f32 %v3029_v54, 0.0  ;;  %v4277_v45 = vadd.f32 %v2937_v17, %v1855_v13 }
 0x204   : > { %3094 = vst [vmem:[%s5722_s20 + $0xc8] sm:$0xff] %v3062_v39  ;;  %v3032_v0 = vadd.f32 %v4276_v41, %v5715_v48 }
 0x205   : > { %v4044_v16 = vpop.f32.mrb[28].mxu1  ;;  %3093 = vst [vmem:[%s5722_s20 + $0xc0] sm:$0xff] %v3061_v61  ;;  %v3031_v49 = vadd.f32 %v4277_v45, %v5715_v48  ;;  %v4244_v33 = vpop.f32.mrb[28].mxu0 }
 0x206   : > { %v1865_v56 = vpop.f32.mrb[29].mxu1  ;;  %v3064_v5 = vmax.f32 %v3032_v0, 0.0  ;;  %v4278_v11 = vadd.f32 %v4244_v33, %v4044_v16  ;;  %v2947_v47 = vpop.f32.mrb[29].mxu0 }
 0x207   : > { %v3063_v63 = vmax.f32 %v3031_v49, 0.0  ;;  %v4279_v23 = vadd.f32 %v2947_v47, %v1865_v56 }
 0x208   : > { %3096 = vst [vmem:[%s5722_s20 + $0xd8] sm:$0xff] %v3064_v5  ;;  %v3034_v57 = vadd.f32 %v4278_v11, %v5715_v48 }
 0x209   : > { %v4047_v14 = vpop.f32.mrb[30].mxu1  ;;  %3095 = vst [vmem:[%s5722_s20 + $0xd0] sm:$0xff] %v3063_v63  ;;  %v3033_v30 = vadd.f32 %v4279_v23, %v5715_v48  ;;  %v4247_v36 = vpop.f32.mrb[30].mxu0 }
 0x20a   : > { %v1875_v38 = vpop.f32.mrb[31].mxu1  ;;  %v3066_v37 = vmax.f32 %v3034_v57, 0.0  ;;  %v4280_v62 = vadd.f32 %v4247_v36, %v4047_v14  ;;  %v2957_v4 = vpop.f32.mrb[31].mxu0 }
 0x20b   : > { %v3065_v35 = vmax.f32 %v3033_v30, 0.0  ;;  %v4281_v44 = vadd.f32 %v2957_v4, %v1875_v38 }
 0x20c   : > { %3098 = vst [vmem:[%s5722_s20 + $0xe8] sm:$0xff] %v3066_v37  ;;  %v3036_v27 = vadd.f32 %v4280_v62, %v5715_v48 }
 0x20d   : > { %3097 = vst [vmem:[%s5722_s20 + $0xe0] sm:$0xff] %v3065_v35  ;;  %v3035_v2 = vadd.f32 %v4281_v44, %v5715_v48 }
 0x20e   : > { %v3068_v34 = vmax.f32 %v3036_v27, 0.0 }
 0x20f   : > { %v3067_v60 = vmax.f32 %v3035_v2, 0.0 }
 0x210   : > { %3100 = vst [vmem:[%s5722_s20 + $0xf8] sm:$0xff] %v3068_v34 }
 0x211   : > { %3099 = vst [vmem:[%s5722_s20 + $0xf0] sm:$0xff] %v3067_v60 }
 0x212 PF: > { %s13_s14 = sadd.s32 1, %s4553_s14   ;;  %s5978_s12 = smov %s4549_s13 }
 0x213   : > { %p10_p5 = scmp.ge.s32.totalorder %s13_s14, 4   ;;  %s5979_s13 = smov %s5981_s15 }
 0x215   :  { %12 = sbr.rel (!%p10_p5) target bundleno = 2 (0x2), region = 71 }

</bundles_post_ra>
